<compile_context>
chip_gen: v6e
topology: v6e:2x2x1
jax: 0.10.0
libtpu: 0.0.40
codegen_flags: <defaults>
</compile_context>

<pallas_src>
import functools
import math

import jax
import jax.numpy as jnp
from jax.experimental import pallas as pl
from jax.experimental.pallas import tpu as pltpu

EMBED_DIM = 32
N_HEADS = 8
HEAD_DIM = EMBED_DIM // N_HEADS
EXPANSION = 4
FF_DIM = EMBED_DIM * EXPANSION
LN_EPS = 1e-5          # torch.nn.LayerNorm default eps
NEG_INF = -1e20        # masked_fill value
LANE = 128             # lane width of the packed slabs / lane-dense output

# ---- packed parameter-slab row layout (static Python ints => free in-kernel slices) ----
_W1_R0 = 0                         # rows   0: 32  cols 0:96  = [Wq1|Wk1|Wv1], cols 96:128 = Wq2
_W2_R0 = EMBED_DIM                 # rows  32: 64  cols 0:64  = [Wk2|Wv2], 64:96 = Wo1, 96:128 = Wo2
_WF1_R0 = 2 * EMBED_DIM            # rows  64: 96  cols 0:128 = Wff1
_WF2_R0 = 3 * EMBED_DIM            # rows  96:224  cols 0:32  = Wff2
_VEC_R0 = 3 * EMBED_DIM + FF_DIM   # rows 224..233: bo1,g0,b0,bo2,g1,b1,bff1,bff2,g2,b2
_P_ROWS = 240                      # 234 used, padded to a multiple of 8


# ---------------------------------- shared math --------------------------------------------
def _layernorm(v, g, b):
    mu = jnp.mean(v, axis=-1, keepdims=True)
    var = jnp.mean((v - mu) ** 2, axis=-1, keepdims=True)
    return (v - mu) * jax.lax.rsqrt(var + LN_EPS) * g + b


# ----------------------------------- Pallas kernel -----------------------------------------
def _split_heads(t2d):
    # (R, H*HD) -> (H, R, HD); heads are contiguous HD-wide lane chunks (torch layout).
    return jnp.stack(
        [t2d[:, h * HEAD_DIM:(h + 1) * HEAD_DIM] for h in range(N_HEADS)], axis=0)


def _attention(q2d, k2d, v2d, wo, bo, bias):
    """Head-batched attention over batch-folded rows.

    q2d/k2d/v2d: (R, D) activations (heads = contiguous HD-column chunks).
    wo: (D, D) original output projection; bo: (1, D).
    bias: (R, R) additive mask bias (0 keep / -1e20 masked), block-diagonal across batches.
    """
    scale = 1.0 / math.sqrt(HEAD_DIM)
    qh, kh, vh = _split_heads(q2d), _split_heads(k2d), _split_heads(v2d)     # (H, R, HD)
    s = jnp.einsum("hqe,hke->hqk", qh, kh,
                   preferred_element_type=jnp.float32) * scale               # (H, R, R)
    s = s + bias[None, :, :]
    s = s - jnp.max(s, axis=-1, keepdims=True)
    e = jnp.exp(s)
    p = e * pl.reciprocal(jnp.sum(e, axis=-1, keepdims=True), approx=True)
    ctx = jnp.einsum("hqk,hke->hqe", p, vh,
                     preferred_element_type=jnp.float32)                     # (H, R, HD)
    # Collapse the per-head output projection: merge heads back onto lanes and run ONE
    # (R,32)@(32,32) matmul instead of 8 K=4 pushes + a cross-head reduction.
    ctx2d = jnp.concatenate([ctx[h] for h in range(N_HEADS)], axis=-1)       # (R, D)
    return jnp.dot(ctx2d, wo, preferred_element_type=jnp.float32) + bo


def decode_block_kernel(d_ref, p_ref, out_ref, *, batch, seq):
    D, F = EMBED_DIM, FF_DIM
    R = batch * seq

    # ---- unpack the data slab (one DMA): [x | enc | self bias | cross bias | pad] ----
    x = d_ref[:, 0:D]                                   # (R, D) decoder input rows
    enc = d_ref[:, D:2 * D]                             # (R, D) encoder output rows
    self_bias = d_ref[:, 2 * D:2 * D + R]               # (R, R) block-diag user/causal bias
    cross_bias = d_ref[:, 2 * D + R:2 * D + 2 * R]      # (R, R) block-diag (batch fold) bias
    # NOTE: for large S the purely structural cross_bias (and a causal self_bias) could be
    # generated in-kernel from broadcasted_iota instead of shipping O(R^2) bytes.

    # ---- unpack the parameter slab (one DMA) with static, free slices ----
    wqkv1 = p_ref[_W1_R0:_W1_R0 + D, 0:3 * D]
    wq2 = p_ref[_W1_R0:_W1_R0 + D, 3 * D:4 * D]
    wkv2 = p_ref[_W2_R0:_W2_R0 + D, 0:2 * D]
    wo1 = p_ref[_W2_R0:_W2_R0 + D, 2 * D:3 * D]
    wo2 = p_ref[_W2_R0:_W2_R0 + D, 3 * D:4 * D]
    wff1 = p_ref[_WF1_R0:_WF1_R0 + D, 0:F]
    wff2 = p_ref[_WF2_R0:_WF2_R0 + F, 0:D]
    bo1 = p_ref[_VEC_R0 + 0:_VEC_R0 + 1, 0:D]
    g0 = p_ref[_VEC_R0 + 1:_VEC_R0 + 2, 0:D]
    b0 = p_ref[_VEC_R0 + 2:_VEC_R0 + 3, 0:D]
    bo2 = p_ref[_VEC_R0 + 3:_VEC_R0 + 4, 0:D]
    g1 = p_ref[_VEC_R0 + 4:_VEC_R0 + 5, 0:D]
    b1 = p_ref[_VEC_R0 + 5:_VEC_R0 + 6, 0:D]
    bff1 = p_ref[_VEC_R0 + 6:_VEC_R0 + 7, 0:F]
    bff2 = p_ref[_VEC_R0 + 7:_VEC_R0 + 8, 0:D]
    g2 = p_ref[_VEC_R0 + 8:_VEC_R0 + 9, 0:D]
    b2 = p_ref[_VEC_R0 + 9:_VEC_R0 + 10, 0:D]

    # 1) masked self-attention + residual + LayerNorm (dropout = identity in eval mode).
    #    Single fused (R,32)@(32,96) Q/K/V projection over all batch-folded rows.
    qkv1 = jnp.dot(x, wqkv1, preferred_element_type=jnp.float32)            # (R, 3D)
    attn = _attention(qkv1[:, 0:D], qkv1[:, D:2 * D], qkv1[:, 2 * D:3 * D],
                      wo1, bo1, self_bias)
    query = _layernorm(attn + x, g0, b0)

    # 2) EncodeLayer cross-attention: q from `query`, k/v from encoder output; residual
    #    with `value` (= encoder output) per the tutorial module, then LayerNorm.
    kv2 = jnp.dot(enc, wkv2, preferred_element_type=jnp.float32)            # (R, 2D)
    q2 = jnp.dot(query, wq2, preferred_element_type=jnp.float32)            # (R, D)
    cross = _attention(q2, kv2[:, 0:D], kv2[:, D:2 * D], wo2, bo2, cross_bias)
    n1 = _layernorm(cross + enc, g1, b1)

    # 3) feed-forward over all rows at once (hidden = 128 lanes -> lane-dense matmuls).
    h = jnp.maximum(jnp.dot(n1, wff1, preferred_element_type=jnp.float32) + bff1, 0.0)
    ff = jnp.dot(h, wff2, preferred_element_type=jnp.float32) + bff2
    y = _layernorm(ff + n1, g2, b2)

    # Lane-dense output slab: write all 128 lanes (unmasked vst); the wrapper slices [:, :D].
    out_ref[...] = jnp.concatenate([y, jnp.zeros((R, LANE - D), jnp.float32)], axis=-1)
    # TODO(synk): nn.Dropout layers are identity here (inference); training-mode dropout omitted.


# ------------------------------ wrapper / param plumbing -----------------------------------
def pack_params(params):
    """Pack all weights/biases into one (240, 128) f32 slab (a single HBM->VMEM DMA)."""
    (wq1, wk1, wv1, wo1, bo1, g0, b0,
     wq2, wk2, wv2, wo2, bo2, g1, b1,
     wff1, bff1, wff2, bff2, g2, b2) = params
    D, F = EMBED_DIM, FF_DIM
    slab = jnp.zeros((_P_ROWS, LANE), jnp.float32)
    slab = slab.at[_W1_R0:_W1_R0 + D, 0:D].set(wq1)
    slab = slab.at[_W1_R0:_W1_R0 + D, D:2 * D].set(wk1)
    slab = slab.at[_W1_R0:_W1_R0 + D, 2 * D:3 * D].set(wv1)
    slab = slab.at[_W1_R0:_W1_R0 + D, 3 * D:4 * D].set(wq2)
    slab = slab.at[_W2_R0:_W2_R0 + D, 0:D].set(wk2)
    slab = slab.at[_W2_R0:_W2_R0 + D, D:2 * D].set(wv2)
    slab = slab.at[_W2_R0:_W2_R0 + D, 2 * D:3 * D].set(wo1)
    slab = slab.at[_W2_R0:_W2_R0 + D, 3 * D:4 * D].set(wo2)
    slab = slab.at[_WF1_R0:_WF1_R0 + D, 0:F].set(wff1)
    slab = slab.at[_WF2_R0:_WF2_R0 + F, 0:D].set(wff2)
    for i, v in enumerate([bo1, g0, b0, bo2, g1, b1]):
        slab = slab.at[_VEC_R0 + i, 0:D].set(v.reshape(-1))
    slab = slab.at[_VEC_R0 + 6, 0:F].set(bff1.reshape(-1))
    for i, v in enumerate([bff2, g2, b2]):
        slab = slab.at[_VEC_R0 + 7 + i, 0:D].set(v.reshape(-1))
    return slab


def pack_data(encode_output, x, mask):
    """Pack x, encoder rows and both block-diagonal attention biases into one (R,128) slab."""
    B, S, D = x.shape
    R = B * S
    assert 2 * D + 2 * R <= LANE, "data slab layout assumes 2*D + 2*B*S <= 128"
    x2 = x.reshape(R, D).astype(jnp.float32)
    enc2 = encode_output.reshape(R, D).astype(jnp.float32)

    # Block-diagonal user mask over batch-folded rows (zero = masked outside the diagonal
    # blocks), which makes one folded attention equivalent to B independent attentions.
    mask_bd = jnp.zeros((R, R), dtype=mask.dtype)
    for b in range(B):
        mask_bd = mask_bd.at[b * S:(b + 1) * S, b * S:(b + 1) * S].set(mask[b])
    self_bias = jnp.where(mask_bd == 0, NEG_INF, 0.0).astype(jnp.float32)

    # Cross-attention bias: purely structural, only blocks cross-batch attention.
    rb = jnp.repeat(jnp.arange(B), S)
    cross_bias = jnp.where(rb[:, None] == rb[None, :], 0.0, NEG_INF).astype(jnp.float32)

    pad = jnp.zeros((R, LANE - 2 * D - 2 * R), jnp.float32)
    return jnp.concatenate([x2, enc2, self_bias, cross_bias, pad], axis=1)   # (R, 128)


def decode_block(encode_output, x, mask, params):
    B, S, D = x.shape
    assert D == EMBED_DIM
    R = B * S
    dslab = pack_data(encode_output, x, mask)
    pslab = pack_params(params)

    out = pl.pallas_call(
        functools.partial(decode_block_kernel, batch=B, seq=S),
        out_shape=jax.ShapeDtypeStruct((R, LANE), jnp.float32),
        grid_spec=pltpu.PrefetchScalarGridSpec(
            num_scalar_prefetch=0,
            grid=(1,),                                   # whole (tiny) problem in one step
            in_specs=[pl.BlockSpec((R, LANE), lambda i: (0, 0)),
                      pl.BlockSpec((_P_ROWS, LANE), lambda i: (0, 0))],
            out_specs=pl.BlockSpec((R, LANE), lambda i: (0, 0)),
        ),
        compiler_params=pltpu.CompilerParams(dimension_semantics=("arbitrary",)),
    )(dslab, pslab)
    return out[:, 0:D].reshape(B, S, D)


# ----------------------------------- parameters / reference --------------------------------
def init_params(key):
    D, F = EMBED_DIM, FF_DIM
    ks = jax.random.split(key, 16)

    def dense(k, shape, scale=0.02):
        return (scale * jax.random.normal(k, shape)).astype(jnp.float32)

    ones = jnp.ones((1, D), jnp.float32)
    zeros = jnp.zeros((1, D), jnp.float32)
    return [
        # self-attention: Wq, Wk, Wv, Wo, bo
        dense(ks[0], (D, D)), dense(ks[1], (D, D)), dense(ks[2], (D, D)),
        dense(ks[3], (D, D)), dense(ks[4], (1, D)),
        # norm (after self-attention): gamma, beta
        ones, zeros,
        # cross-attention (inside EncodeLayer): Wq, Wk, Wv, Wo, bo
        dense(ks[5], (D, D)), dense(ks[6], (D, D)), dense(ks[7], (D, D)),
        dense(ks[8], (D, D)), dense(ks[9], (1, D)),
        # norm1
        ones, zeros,
        # feed-forward: W1, b1, W2, b2
        dense(ks[10], (D, F)), dense(ks[11], (1, F)),
        dense(ks[12], (F, D)), dense(ks[13], (1, D)),
        # norm2
        ones, zeros,
    ]


def _mha_ref(q_in, k_in, v_in, wq, wk, wv, wo, bo, msk):
    q = jnp.dot(q_in, wq)
    k = jnp.dot(k_in, wk)
    v = jnp.dot(v_in, wv)
    scale = 1.0 / math.sqrt(HEAD_DIM)
    heads = []
    for h in range(N_HEADS):
        lo = h * HEAD_DIM
        qh, kh, vh = q[:, lo:lo + HEAD_DIM], k[:, lo:lo + HEAD_DIM], v[:, lo:lo + HEAD_DIM]
        s = jnp.dot(qh, kh.T) * scale
        if msk is not None:
            s = jnp.where(msk == 0, NEG_INF, s)
        s = s - jnp.max(s, axis=-1, keepdims=True)
        e = jnp.exp(s)
        p = e / jnp.sum(e, axis=-1, keepdims=True)
        heads.append(jnp.dot(p, vh))
    return jnp.dot(jnp.concatenate(heads, axis=-1), wo) + bo


def decode_block_ref(enc, x, mask, params):
    (wq1, wk1, wv1, wo1, bo1, g0, b0,
     wq2, wk2, wv2, wo2, bo2, g1, b1,
     wff1, bff1, wff2, bff2, g2, b2) = params
    outs = []
    for bi in range(x.shape[0]):
        xb, eb, mb = x[bi], enc[bi], mask[bi]
        attn = _mha_ref(xb, xb, xb, wq1, wk1, wv1, wo1, bo1, mb)
        query = _layernorm(attn + xb, g0, b0)
        cross = _mha_ref(query, eb, eb, wq2, wk2, wv2, wo2, bo2, None)
        n1 = _layernorm(cross + eb, g1, b1)
        h = jnp.maximum(jnp.dot(n1, wff1) + bff1, 0.0)
        ff = jnp.dot(h, wff2) + bff2
        outs.append(_layernorm(ff + n1, g2, b2))
    return jnp.stack(outs)


# ---------------------------------------- main ----------------------------------------------
if __name__ == "__main__":
    B, S, D = 2, 8, EMBED_DIM
    key = jax.random.PRNGKey(0)
    k_enc, k_x, k_p = jax.random.split(key, 3)

    encode_output = jax.random.normal(k_enc, (B, S, D), dtype=jnp.float32)
    x = jax.random.normal(k_x, (B, S, D), dtype=jnp.float32)
    mask = jnp.broadcast_to(jnp.tril(jnp.ones((S, S), jnp.float32)), (B, S, S))
    params = init_params(k_p)

    out = jax.block_until_ready(decode_block(encode_output, x, mask, params))
    ref = decode_block_ref(encode_output, x, mask, params)

    assert out.shape == (B, S, D)
    assert jnp.allclose(out, ref, atol=2e-3, rtol=2e-3), "kernel/reference mismatch"

    print("KERNEL_OK")
</pallas_src>

<mosaic_0001>
module attributes {stable_mosaic.version = 11 : i64} {
  func.func @decode_block_kernel(%arg0: i32, %arg1: memref<16x128xf32, #tpu.memory_space<vmem>>, %arg2: memref<240x128xf32, #tpu.memory_space<vmem>>, %arg3: memref<16x128xf32, #tpu.memory_space<vmem>>) attributes {dimension_semantics = [#tpu.dimension_semantics<arbitrary>], iteration_bounds = array<i64: 1>, scalar_prefetch = 0 : i64, scratch_operands = 0 : i64, tpu.core_type = #tpu.core_type<tc>, window_params = [{pipeline_mode = #tpu.pipeline_mode<synchronous>, transform_indices = @transform_0, window_bounds = array<i64: 16, 128>}, {pipeline_mode = #tpu.pipeline_mode<synchronous>, transform_indices = @transform_1, window_bounds = array<i64: 240, 128>}, {pipeline_mode = #tpu.pipeline_mode<synchronous>, transform_indices = @transform_2, window_bounds = array<i64: 16, 128>}]} {
    %c0 = arith.constant 0 : index
    %c0_0 = arith.constant 0 : index
    %0 = vector.load %arg1[%c0, %c0_0] : memref<16x128xf32, #tpu.memory_space<vmem>>, vector<16x32xf32>
    %c0_1 = arith.constant 0 : index
    %c32 = arith.constant 32 : index
    %1 = vector.load %arg1[%c0_1, %c32] : memref<16x128xf32, #tpu.memory_space<vmem>>, vector<16x32xf32>
    %c0_2 = arith.constant 0 : index
    %c64 = arith.constant 64 : index
    %2 = vector.load %arg1[%c0_2, %c64] : memref<16x128xf32, #tpu.memory_space<vmem>>, vector<16x16xf32>
    %c0_3 = arith.constant 0 : index
    %c80 = arith.constant 80 : index
    %3 = vector.load %arg1[%c0_3, %c80] : memref<16x128xf32, #tpu.memory_space<vmem>>, vector<16x16xf32>
    %c0_4 = arith.constant 0 : index
    %c0_5 = arith.constant 0 : index
    %4 = vector.load %arg2[%c0_4, %c0_5] : memref<240x128xf32, #tpu.memory_space<vmem>>, vector<32x96xf32>
    %c0_6 = arith.constant 0 : index
    %c96 = arith.constant 96 : index
    %5 = vector.load %arg2[%c0_6, %c96] : memref<240x128xf32, #tpu.memory_space<vmem>>, vector<32x32xf32>
    %c32_7 = arith.constant 32 : index
    %c0_8 = arith.constant 0 : index
    %6 = vector.load %arg2[%c32_7, %c0_8] : memref<240x128xf32, #tpu.memory_space<vmem>>, vector<32x64xf32>
    %c32_9 = arith.constant 32 : index
    %c64_10 = arith.constant 64 : index
    %7 = vector.load %arg2[%c32_9, %c64_10] : memref<240x128xf32, #tpu.memory_space<vmem>>, vector<32x32xf32>
    %c32_11 = arith.constant 32 : index
    %c96_12 = arith.constant 96 : index
    %8 = vector.load %arg2[%c32_11, %c96_12] : memref<240x128xf32, #tpu.memory_space<vmem>>, vector<32x32xf32>
    %c64_13 = arith.constant 64 : index
    %c0_14 = arith.constant 0 : index
    %9 = vector.load %arg2[%c64_13, %c0_14] : memref<240x128xf32, #tpu.memory_space<vmem>>, vector<32x128xf32>
    %c96_15 = arith.constant 96 : index
    %c0_16 = arith.constant 0 : index
    %10 = vector.load %arg2[%c96_15, %c0_16] : memref<240x128xf32, #tpu.memory_space<vmem>>, vector<128x32xf32>
    %c224 = arith.constant 224 : index
    %c0_17 = arith.constant 0 : index
    %11 = vector.load %arg2[%c224, %c0_17] : memref<240x128xf32, #tpu.memory_space<vmem>>, vector<1x32xf32>
    %c225 = arith.constant 225 : index
    %c0_18 = arith.constant 0 : index
    %12 = vector.load %arg2[%c225, %c0_18] : memref<240x128xf32, #tpu.memory_space<vmem>>, vector<1x32xf32>
    %c226 = arith.constant 226 : index
    %c0_19 = arith.constant 0 : index
    %13 = vector.load %arg2[%c226, %c0_19] : memref<240x128xf32, #tpu.memory_space<vmem>>, vector<1x32xf32>
    %c227 = arith.constant 227 : index
    %c0_20 = arith.constant 0 : index
    %14 = vector.load %arg2[%c227, %c0_20] : memref<240x128xf32, #tpu.memory_space<vmem>>, vector<1x32xf32>
    %c228 = arith.constant 228 : index
    %c0_21 = arith.constant 0 : index
    %15 = vector.load %arg2[%c228, %c0_21] : memref<240x128xf32, #tpu.memory_space<vmem>>, vector<1x32xf32>
    %c229 = arith.constant 229 : index
    %c0_22 = arith.constant 0 : index
    %16 = vector.load %arg2[%c229, %c0_22] : memref<240x128xf32, #tpu.memory_space<vmem>>, vector<1x32xf32>
    %c230 = arith.constant 230 : index
    %c0_23 = arith.constant 0 : index
    %17 = vector.load %arg2[%c230, %c0_23] : memref<240x128xf32, #tpu.memory_space<vmem>>, vector<1x128xf32>
    %c231 = arith.constant 231 : index
    %c0_24 = arith.constant 0 : index
    %18 = vector.load %arg2[%c231, %c0_24] : memref<240x128xf32, #tpu.memory_space<vmem>>, vector<1x32xf32>
    %c232 = arith.constant 232 : index
    %c0_25 = arith.constant 0 : index
    %19 = vector.load %arg2[%c232, %c0_25] : memref<240x128xf32, #tpu.memory_space<vmem>>, vector<1x32xf32>
    %c233 = arith.constant 233 : index
    %c0_26 = arith.constant 0 : index
    %20 = vector.load %arg2[%c233, %c0_26] : memref<240x128xf32, #tpu.memory_space<vmem>>, vector<1x32xf32>
    %cst = arith.constant dense<0.000000e+00> : vector<16x96xf32>
    %21 = tpu.matmul %0, %4, %cst {dimension_numbers = #tpu.dot_dimension_numbers<[1], [0], [0], [1], [0, 0, 1, 1], [], []>} : vector<16x32xf32>, vector<32x96xf32>, vector<16x96xf32> -> vector<16x96xf32>
    %22 = vector.extract_strided_slice %21 {offsets = [0, 0], sizes = [16, 32], strides = [1, 1]} : vector<16x96xf32> to vector<16x32xf32>
    %23 = vector.extract_strided_slice %21 {offsets = [0, 32], sizes = [16, 32], strides = [1, 1]} : vector<16x96xf32> to vector<16x32xf32>
    %24 = vector.extract_strided_slice %21 {offsets = [0, 64], sizes = [16, 32], strides = [1, 1]} : vector<16x96xf32> to vector<16x32xf32>
    %25 = vector.extract_strided_slice %22 {offsets = [0, 0], sizes = [16, 4], strides = [1, 1]} : vector<16x32xf32> to vector<16x4xf32>
    %26 = vector.extract_strided_slice %22 {offsets = [0, 4], sizes = [16, 4], strides = [1, 1]} : vector<16x32xf32> to vector<16x4xf32>
    %27 = vector.extract_strided_slice %22 {offsets = [0, 8], sizes = [16, 4], strides = [1, 1]} : vector<16x32xf32> to vector<16x4xf32>
    %28 = vector.extract_strided_slice %22 {offsets = [0, 12], sizes = [16, 4], strides = [1, 1]} : vector<16x32xf32> to vector<16x4xf32>
    %29 = vector.extract_strided_slice %22 {offsets = [0, 16], sizes = [16, 4], strides = [1, 1]} : vector<16x32xf32> to vector<16x4xf32>
    %30 = vector.extract_strided_slice %22 {offsets = [0, 20], sizes = [16, 4], strides = [1, 1]} : vector<16x32xf32> to vector<16x4xf32>
    %31 = vector.extract_strided_slice %22 {offsets = [0, 24], sizes = [16, 4], strides = [1, 1]} : vector<16x32xf32> to vector<16x4xf32>
    %32 = vector.extract_strided_slice %22 {offsets = [0, 28], sizes = [16, 4], strides = [1, 1]} : vector<16x32xf32> to vector<16x4xf32>
    %33 = vector.shape_cast %25 : vector<16x4xf32> to vector<1x16x4xf32>
    %34 = vector.shape_cast %26 : vector<16x4xf32> to vector<1x16x4xf32>
    %35 = vector.shape_cast %27 : vector<16x4xf32> to vector<1x16x4xf32>
    %36 = vector.shape_cast %28 : vector<16x4xf32> to vector<1x16x4xf32>
    %37 = vector.shape_cast %29 : vector<16x4xf32> to vector<1x16x4xf32>
    %38 = vector.shape_cast %30 : vector<16x4xf32> to vector<1x16x4xf32>
    %39 = vector.shape_cast %31 : vector<16x4xf32> to vector<1x16x4xf32>
    %40 = vector.shape_cast %32 : vector<16x4xf32> to vector<1x16x4xf32>
    %41 = tpu.concatenate %33, %34, %35, %36, %37, %38, %39, %40 in 0 : vector<1x16x4xf32>, vector<1x16x4xf32>, vector<1x16x4xf32>, vector<1x16x4xf32>, vector<1x16x4xf32>, vector<1x16x4xf32>, vector<1x16x4xf32>, vector<1x16x4xf32> -> vector<8x16x4xf32>
    %42 = vector.extract_strided_slice %23 {offsets = [0, 0], sizes = [16, 4], strides = [1, 1]} : vector<16x32xf32> to vector<16x4xf32>
    %43 = vector.extract_strided_slice %23 {offsets = [0, 4], sizes = [16, 4], strides = [1, 1]} : vector<16x32xf32> to vector<16x4xf32>
    %44 = vector.extract_strided_slice %23 {offsets = [0, 8], sizes = [16, 4], strides = [1, 1]} : vector<16x32xf32> to vector<16x4xf32>
    %45 = vector.extract_strided_slice %23 {offsets = [0, 12], sizes = [16, 4], strides = [1, 1]} : vector<16x32xf32> to vector<16x4xf32>
    %46 = vector.extract_strided_slice %23 {offsets = [0, 16], sizes = [16, 4], strides = [1, 1]} : vector<16x32xf32> to vector<16x4xf32>
    %47 = vector.extract_strided_slice %23 {offsets = [0, 20], sizes = [16, 4], strides = [1, 1]} : vector<16x32xf32> to vector<16x4xf32>
    %48 = vector.extract_strided_slice %23 {offsets = [0, 24], sizes = [16, 4], strides = [1, 1]} : vector<16x32xf32> to vector<16x4xf32>
    %49 = vector.extract_strided_slice %23 {offsets = [0, 28], sizes = [16, 4], strides = [1, 1]} : vector<16x32xf32> to vector<16x4xf32>
    %50 = vector.shape_cast %42 : vector<16x4xf32> to vector<1x16x4xf32>
    %51 = vector.shape_cast %43 : vector<16x4xf32> to vector<1x16x4xf32>
    %52 = vector.shape_cast %44 : vector<16x4xf32> to vector<1x16x4xf32>
    %53 = vector.shape_cast %45 : vector<16x4xf32> to vector<1x16x4xf32>
    %54 = vector.shape_cast %46 : vector<16x4xf32> to vector<1x16x4xf32>
    %55 = vector.shape_cast %47 : vector<16x4xf32> to vector<1x16x4xf32>
    %56 = vector.shape_cast %48 : vector<16x4xf32> to vector<1x16x4xf32>
    %57 = vector.shape_cast %49 : vector<16x4xf32> to vector<1x16x4xf32>
    %58 = tpu.concatenate %50, %51, %52, %53, %54, %55, %56, %57 in 0 : vector<1x16x4xf32>, vector<1x16x4xf32>, vector<1x16x4xf32>, vector<1x16x4xf32>, vector<1x16x4xf32>, vector<1x16x4xf32>, vector<1x16x4xf32>, vector<1x16x4xf32> -> vector<8x16x4xf32>
    %59 = vector.extract_strided_slice %24 {offsets = [0, 0], sizes = [16, 4], strides = [1, 1]} : vector<16x32xf32> to vector<16x4xf32>
    %60 = vector.extract_strided_slice %24 {offsets = [0, 4], sizes = [16, 4], strides = [1, 1]} : vector<16x32xf32> to vector<16x4xf32>
    %61 = vector.extract_strided_slice %24 {offsets = [0, 8], sizes = [16, 4], strides = [1, 1]} : vector<16x32xf32> to vector<16x4xf32>
    %62 = vector.extract_strided_slice %24 {offsets = [0, 12], sizes = [16, 4], strides = [1, 1]} : vector<16x32xf32> to vector<16x4xf32>
    %63 = vector.extract_strided_slice %24 {offsets = [0, 16], sizes = [16, 4], strides = [1, 1]} : vector<16x32xf32> to vector<16x4xf32>
    %64 = vector.extract_strided_slice %24 {offsets = [0, 20], sizes = [16, 4], strides = [1, 1]} : vector<16x32xf32> to vector<16x4xf32>
    %65 = vector.extract_strided_slice %24 {offsets = [0, 24], sizes = [16, 4], strides = [1, 1]} : vector<16x32xf32> to vector<16x4xf32>
    %66 = vector.extract_strided_slice %24 {offsets = [0, 28], sizes = [16, 4], strides = [1, 1]} : vector<16x32xf32> to vector<16x4xf32>
    %67 = vector.shape_cast %59 : vector<16x4xf32> to vector<1x16x4xf32>
    %68 = vector.shape_cast %60 : vector<16x4xf32> to vector<1x16x4xf32>
    %69 = vector.shape_cast %61 : vector<16x4xf32> to vector<1x16x4xf32>
    %70 = vector.shape_cast %62 : vector<16x4xf32> to vector<1x16x4xf32>
    %71 = vector.shape_cast %63 : vector<16x4xf32> to vector<1x16x4xf32>
    %72 = vector.shape_cast %64 : vector<16x4xf32> to vector<1x16x4xf32>
    %73 = vector.shape_cast %65 : vector<16x4xf32> to vector<1x16x4xf32>
    %74 = vector.shape_cast %66 : vector<16x4xf32> to vector<1x16x4xf32>
    %75 = tpu.concatenate %67, %68, %69, %70, %71, %72, %73, %74 in 0 : vector<1x16x4xf32>, vector<1x16x4xf32>, vector<1x16x4xf32>, vector<1x16x4xf32>, vector<1x16x4xf32>, vector<1x16x4xf32>, vector<1x16x4xf32>, vector<1x16x4xf32> -> vector<8x16x4xf32>
    "tpu.trace_start"() <{level = 10 : i32, message = "hqe,hke->hqk"}> : () -> ()
    %cst_27 = arith.constant dense<0.000000e+00> : vector<8x16x16xf32>
    %76 = tpu.matmul %41, %58, %cst_27 {dimension_numbers = #tpu.dot_dimension_numbers<[2], [2], [1], [1], [0, 0, 0, 1, 1, 1], [0], [0]>} : vector<8x16x4xf32>, vector<8x16x4xf32>, vector<8x16x16xf32> -> vector<8x16x16xf32>
    "tpu.trace_stop"() : () -> ()
    %cst_28 = arith.constant 5.000000e-01 : f32
    %77 = vector.broadcast %cst_28 : f32 to vector<8x16x16xf32>
    %78 = arith.mulf %76, %77 : vector<8x16x16xf32>
    %79 = vector.shape_cast %2 : vector<16x16xf32> to vector<1x16x16xf32>
    %80 = vector.broadcast %79 : vector<1x16x16xf32> to vector<8x16x16xf32>
    %81 = arith.addf %78, %80 : vector<8x16x16xf32>
    %cst_29 = arith.constant dense<0xFF800000> : vector<8x16xf32>
    %82 = vector.multi_reduction <maximumf>, %81, %cst_29 [2] : vector<8x16x16xf32> to vector<8x16xf32>
    %83 = vector.shape_cast %82 : vector<8x16xf32> to vector<8x16x1xf32>
    %84 = vector.broadcast %83 : vector<8x16x1xf32> to vector<8x16x16xf32>
    %85 = arith.subf %81, %84 : vector<8x16x16xf32>
    %86 = math.exp %85 : vector<8x16x16xf32>
    %cst_30 = arith.constant dense<0.000000e+00> : vector<8x16xf32>
    %87 = vector.multi_reduction <add>, %86, %cst_30 [2] : vector<8x16x16xf32> to vector<8x16xf32>
    %88 = vector.shape_cast %87 : vector<8x16xf32> to vector<8x16x1xf32>
    %89 = tpu.reciprocal %88 {approx = true} : vector<8x16x1xf32> -> vector<8x16x1xf32>
    %90 = vector.broadcast %89 : vector<8x16x1xf32> to vector<8x16x16xf32>
    %91 = arith.mulf %86, %90 : vector<8x16x16xf32>
    "tpu.trace_start"() <{level = 10 : i32, message = "hqk,hke->hqe"}> : () -> ()
    %cst_31 = arith.constant dense<0.000000e+00> : vector<8x16x4xf32>
    %92 = tpu.matmul %91, %75, %cst_31 {dimension_numbers = #tpu.dot_dimension_numbers<[2], [1], [1], [2], [0, 0, 0, 1, 1, 2], [0], [0]>} : vector<8x16x16xf32>, vector<8x16x4xf32>, vector<8x16x4xf32> -> vector<8x16x4xf32>
    "tpu.trace_stop"() : () -> ()
    %93 = vector.extract_strided_slice %92 {offsets = [0, 0, 0], sizes = [1, 16, 4], strides = [1, 1, 1]} : vector<8x16x4xf32> to vector<1x16x4xf32>
    %94 = vector.shape_cast %93 : vector<1x16x4xf32> to vector<16x4xf32>
    %95 = vector.extract_strided_slice %92 {offsets = [1, 0, 0], sizes = [1, 16, 4], strides = [1, 1, 1]} : vector<8x16x4xf32> to vector<1x16x4xf32>
    %96 = vector.shape_cast %95 : vector<1x16x4xf32> to vector<16x4xf32>
    %97 = vector.extract_strided_slice %92 {offsets = [2, 0, 0], sizes = [1, 16, 4], strides = [1, 1, 1]} : vector<8x16x4xf32> to vector<1x16x4xf32>
    %98 = vector.shape_cast %97 : vector<1x16x4xf32> to vector<16x4xf32>
    %99 = vector.extract_strided_slice %92 {offsets = [3, 0, 0], sizes = [1, 16, 4], strides = [1, 1, 1]} : vector<8x16x4xf32> to vector<1x16x4xf32>
    %100 = vector.shape_cast %99 : vector<1x16x4xf32> to vector<16x4xf32>
    %101 = vector.extract_strided_slice %92 {offsets = [4, 0, 0], sizes = [1, 16, 4], strides = [1, 1, 1]} : vector<8x16x4xf32> to vector<1x16x4xf32>
    %102 = vector.shape_cast %101 : vector<1x16x4xf32> to vector<16x4xf32>
    %103 = vector.extract_strided_slice %92 {offsets = [5, 0, 0], sizes = [1, 16, 4], strides = [1, 1, 1]} : vector<8x16x4xf32> to vector<1x16x4xf32>
    %104 = vector.shape_cast %103 : vector<1x16x4xf32> to vector<16x4xf32>
    %105 = vector.extract_strided_slice %92 {offsets = [6, 0, 0], sizes = [1, 16, 4], strides = [1, 1, 1]} : vector<8x16x4xf32> to vector<1x16x4xf32>
    %106 = vector.shape_cast %105 : vector<1x16x4xf32> to vector<16x4xf32>
    %107 = vector.extract_strided_slice %92 {offsets = [7, 0, 0], sizes = [1, 16, 4], strides = [1, 1, 1]} : vector<8x16x4xf32> to vector<1x16x4xf32>
    %108 = vector.shape_cast %107 : vector<1x16x4xf32> to vector<16x4xf32>
    %109 = tpu.concatenate %94, %96, %98, %100, %102, %104, %106, %108 in 1 : vector<16x4xf32>, vector<16x4xf32>, vector<16x4xf32>, vector<16x4xf32>, vector<16x4xf32>, vector<16x4xf32>, vector<16x4xf32>, vector<16x4xf32> -> vector<16x32xf32>
    %cst_32 = arith.constant dense<0.000000e+00> : vector<16x32xf32>
    %110 = tpu.matmul %109, %7, %cst_32 {dimension_numbers = #tpu.dot_dimension_numbers<[1], [0], [0], [1], [0, 0, 1, 1], [], []>} : vector<16x32xf32>, vector<32x32xf32>, vector<16x32xf32> -> vector<16x32xf32>
    %111 = vector.broadcast %11 : vector<1x32xf32> to vector<16x32xf32>
    %112 = arith.addf %110, %111 : vector<16x32xf32>
    %113 = arith.addf %112, %0 : vector<16x32xf32>
    %cst_33 = arith.constant dense<0.000000e+00> : vector<16xf32>
    %114 = vector.multi_reduction <add>, %113, %cst_33 [1] : vector<16x32xf32> to vector<16xf32>
    %115 = vector.shape_cast %114 : vector<16xf32> to vector<16x1xf32>
    %cst_34 = arith.constant 3.200000e+01 : f32
    %116 = vector.broadcast %cst_34 : f32 to vector<16x1xf32>
    %117 = arith.divf %115, %116 : vector<16x1xf32>
    %118 = vector.broadcast %117 : vector<16x1xf32> to vector<16x32xf32>
    %119 = arith.subf %113, %118 : vector<16x32xf32>
    %120 = arith.mulf %119, %119 : vector<16x32xf32>
    %cst_35 = arith.constant dense<0.000000e+00> : vector<16xf32>
    %121 = vector.multi_reduction <add>, %120, %cst_35 [1] : vector<16x32xf32> to vector<16xf32>
    %122 = vector.shape_cast %121 : vector<16xf32> to vector<16x1xf32>
    %cst_36 = arith.constant 3.200000e+01 : f32
    %123 = vector.broadcast %cst_36 : f32 to vector<16x1xf32>
    %124 = arith.divf %122, %123 : vector<16x1xf32>
    %125 = vector.broadcast %117 : vector<16x1xf32> to vector<16x32xf32>
    %126 = arith.subf %113, %125 : vector<16x32xf32>
    %cst_37 = arith.constant 9.99999974E-6 : f32
    %127 = vector.broadcast %cst_37 : f32 to vector<16x1xf32>
    %128 = arith.addf %124, %127 : vector<16x1xf32>
    %129 = math.rsqrt %128 : vector<16x1xf32>
    %130 = vector.broadcast %129 : vector<16x1xf32> to vector<16x32xf32>
    %131 = arith.mulf %126, %130 : vector<16x32xf32>
    %132 = vector.broadcast %12 : vector<1x32xf32> to vector<16x32xf32>
    %133 = arith.mulf %131, %132 : vector<16x32xf32>
    %134 = vector.broadcast %13 : vector<1x32xf32> to vector<16x32xf32>
    %135 = arith.addf %133, %134 : vector<16x32xf32>
    %cst_38 = arith.constant dense<0.000000e+00> : vector<16x64xf32>
    %136 = tpu.matmul %1, %6, %cst_38 {dimension_numbers = #tpu.dot_dimension_numbers<[1], [0], [0], [1], [0, 0, 1, 1], [], []>} : vector<16x32xf32>, vector<32x64xf32>, vector<16x64xf32> -> vector<16x64xf32>
    %cst_39 = arith.constant dense<0.000000e+00> : vector<16x32xf32>
    %137 = tpu.matmul %135, %5, %cst_39 {dimension_numbers = #tpu.dot_dimension_numbers<[1], [0], [0], [1], [0, 0, 1, 1], [], []>} : vector<16x32xf32>, vector<32x32xf32>, vector<16x32xf32> -> vector<16x32xf32>
    %138 = vector.extract_strided_slice %136 {offsets = [0, 0], sizes = [16, 32], strides = [1, 1]} : vector<16x64xf32> to vector<16x32xf32>
    %139 = vector.extract_strided_slice %136 {offsets = [0, 32], sizes = [16, 32], strides = [1, 1]} : vector<16x64xf32> to vector<16x32xf32>
    %140 = vector.extract_strided_slice %137 {offsets = [0, 0], sizes = [16, 4], strides = [1, 1]} : vector<16x32xf32> to vector<16x4xf32>
    %141 = vector.extract_strided_slice %137 {offsets = [0, 4], sizes = [16, 4], strides = [1, 1]} : vector<16x32xf32> to vector<16x4xf32>
    %142 = vector.extract_strided_slice %137 {offsets = [0, 8], sizes = [16, 4], strides = [1, 1]} : vector<16x32xf32> to vector<16x4xf32>
    %143 = vector.extract_strided_slice %137 {offsets = [0, 12], sizes = [16, 4], strides = [1, 1]} : vector<16x32xf32> to vector<16x4xf32>
    %144 = vector.extract_strided_slice %137 {offsets = [0, 16], sizes = [16, 4], strides = [1, 1]} : vector<16x32xf32> to vector<16x4xf32>
    %145 = vector.extract_strided_slice %137 {offsets = [0, 20], sizes = [16, 4], strides = [1, 1]} : vector<16x32xf32> to vector<16x4xf32>
    %146 = vector.extract_strided_slice %137 {offsets = [0, 24], sizes = [16, 4], strides = [1, 1]} : vector<16x32xf32> to vector<16x4xf32>
    %147 = vector.extract_strided_slice %137 {offsets = [0, 28], sizes = [16, 4], strides = [1, 1]} : vector<16x32xf32> to vector<16x4xf32>
    %148 = vector.shape_cast %140 : vector<16x4xf32> to vector<1x16x4xf32>
    %149 = vector.shape_cast %141 : vector<16x4xf32> to vector<1x16x4xf32>
    %150 = vector.shape_cast %142 : vector<16x4xf32> to vector<1x16x4xf32>
    %151 = vector.shape_cast %143 : vector<16x4xf32> to vector<1x16x4xf32>
    %152 = vector.shape_cast %144 : vector<16x4xf32> to vector<1x16x4xf32>
    %153 = vector.shape_cast %145 : vector<16x4xf32> to vector<1x16x4xf32>
    %154 = vector.shape_cast %146 : vector<16x4xf32> to vector<1x16x4xf32>
    %155 = vector.shape_cast %147 : vector<16x4xf32> to vector<1x16x4xf32>
    %156 = tpu.concatenate %148, %149, %150, %151, %152, %153, %154, %155 in 0 : vector<1x16x4xf32>, vector<1x16x4xf32>, vector<1x16x4xf32>, vector<1x16x4xf32>, vector<1x16x4xf32>, vector<1x16x4xf32>, vector<1x16x4xf32>, vector<1x16x4xf32> -> vector<8x16x4xf32>
    %157 = vector.extract_strided_slice %138 {offsets = [0, 0], sizes = [16, 4], strides = [1, 1]} : vector<16x32xf32> to vector<16x4xf32>
    %158 = vector.extract_strided_slice %138 {offsets = [0, 4], sizes = [16, 4], strides = [1, 1]} : vector<16x32xf32> to vector<16x4xf32>
    %159 = vector.extract_strided_slice %138 {offsets = [0, 8], sizes = [16, 4], strides = [1, 1]} : vector<16x32xf32> to vector<16x4xf32>
    %160 = vector.extract_strided_slice %138 {offsets = [0, 12], sizes = [16, 4], strides = [1, 1]} : vector<16x32xf32> to vector<16x4xf32>
    %161 = vector.extract_strided_slice %138 {offsets = [0, 16], sizes = [16, 4], strides = [1, 1]} : vector<16x32xf32> to vector<16x4xf32>
    %162 = vector.extract_strided_slice %138 {offsets = [0, 20], sizes = [16, 4], strides = [1, 1]} : vector<16x32xf32> to vector<16x4xf32>
    %163 = vector.extract_strided_slice %138 {offsets = [0, 24], sizes = [16, 4], strides = [1, 1]} : vector<16x32xf32> to vector<16x4xf32>
    %164 = vector.extract_strided_slice %138 {offsets = [0, 28], sizes = [16, 4], strides = [1, 1]} : vector<16x32xf32> to vector<16x4xf32>
    %165 = vector.shape_cast %157 : vector<16x4xf32> to vector<1x16x4xf32>
    %166 = vector.shape_cast %158 : vector<16x4xf32> to vector<1x16x4xf32>
    %167 = vector.shape_cast %159 : vector<16x4xf32> to vector<1x16x4xf32>
    %168 = vector.shape_cast %160 : vector<16x4xf32> to vector<1x16x4xf32>
    %169 = vector.shape_cast %161 : vector<16x4xf32> to vector<1x16x4xf32>
    %170 = vector.shape_cast %162 : vector<16x4xf32> to vector<1x16x4xf32>
    %171 = vector.shape_cast %163 : vector<16x4xf32> to vector<1x16x4xf32>
    %172 = vector.shape_cast %164 : vector<16x4xf32> to vector<1x16x4xf32>
    %173 = tpu.concatenate %165, %166, %167, %168, %169, %170, %171, %172 in 0 : vector<1x16x4xf32>, vector<1x16x4xf32>, vector<1x16x4xf32>, vector<1x16x4xf32>, vector<1x16x4xf32>, vector<1x16x4xf32>, vector<1x16x4xf32>, vector<1x16x4xf32> -> vector<8x16x4xf32>
    %174 = vector.extract_strided_slice %139 {offsets = [0, 0], sizes = [16, 4], strides = [1, 1]} : vector<16x32xf32> to vector<16x4xf32>
    %175 = vector.extract_strided_slice %139 {offsets = [0, 4], sizes = [16, 4], strides = [1, 1]} : vector<16x32xf32> to vector<16x4xf32>
    %176 = vector.extract_strided_slice %139 {offsets = [0, 8], sizes = [16, 4], strides = [1, 1]} : vector<16x32xf32> to vector<16x4xf32>
    %177 = vector.extract_strided_slice %139 {offsets = [0, 12], sizes = [16, 4], strides = [1, 1]} : vector<16x32xf32> to vector<16x4xf32>
    %178 = vector.extract_strided_slice %139 {offsets = [0, 16], sizes = [16, 4], strides = [1, 1]} : vector<16x32xf32> to vector<16x4xf32>
    %179 = vector.extract_strided_slice %139 {offsets = [0, 20], sizes = [16, 4], strides = [1, 1]} : vector<16x32xf32> to vector<16x4xf32>
    %180 = vector.extract_strided_slice %139 {offsets = [0, 24], sizes = [16, 4], strides = [1, 1]} : vector<16x32xf32> to vector<16x4xf32>
    %181 = vector.extract_strided_slice %139 {offsets = [0, 28], sizes = [16, 4], strides = [1, 1]} : vector<16x32xf32> to vector<16x4xf32>
    %182 = vector.shape_cast %174 : vector<16x4xf32> to vector<1x16x4xf32>
    %183 = vector.shape_cast %175 : vector<16x4xf32> to vector<1x16x4xf32>
    %184 = vector.shape_cast %176 : vector<16x4xf32> to vector<1x16x4xf32>
    %185 = vector.shape_cast %177 : vector<16x4xf32> to vector<1x16x4xf32>
    %186 = vector.shape_cast %178 : vector<16x4xf32> to vector<1x16x4xf32>
    %187 = vector.shape_cast %179 : vector<16x4xf32> to vector<1x16x4xf32>
    %188 = vector.shape_cast %180 : vector<16x4xf32> to vector<1x16x4xf32>
    %189 = vector.shape_cast %181 : vector<16x4xf32> to vector<1x16x4xf32>
    %190 = tpu.concatenate %182, %183, %184, %185, %186, %187, %188, %189 in 0 : vector<1x16x4xf32>, vector<1x16x4xf32>, vector<1x16x4xf32>, vector<1x16x4xf32>, vector<1x16x4xf32>, vector<1x16x4xf32>, vector<1x16x4xf32>, vector<1x16x4xf32> -> vector<8x16x4xf32>
    "tpu.trace_start"() <{level = 10 : i32, message = "hqe,hke->hqk"}> : () -> ()
    %cst_40 = arith.constant dense<0.000000e+00> : vector<8x16x16xf32>
    %191 = tpu.matmul %156, %173, %cst_40 {dimension_numbers = #tpu.dot_dimension_numbers<[2], [2], [1], [1], [0, 0, 0, 1, 1, 1], [0], [0]>} : vector<8x16x4xf32>, vector<8x16x4xf32>, vector<8x16x16xf32> -> vector<8x16x16xf32>
    "tpu.trace_stop"() : () -> ()
    %cst_41 = arith.constant 5.000000e-01 : f32
    %192 = vector.broadcast %cst_41 : f32 to vector<8x16x16xf32>
    %193 = arith.mulf %191, %192 : vector<8x16x16xf32>
    %194 = vector.shape_cast %3 : vector<16x16xf32> to vector<1x16x16xf32>
    %195 = vector.broadcast %194 : vector<1x16x16xf32> to vector<8x16x16xf32>
    %196 = arith.addf %193, %195 : vector<8x16x16xf32>
    %cst_42 = arith.constant dense<0xFF800000> : vector<8x16xf32>
    %197 = vector.multi_reduction <maximumf>, %196, %cst_42 [2] : vector<8x16x16xf32> to vector<8x16xf32>
    %198 = vector.shape_cast %197 : vector<8x16xf32> to vector<8x16x1xf32>
    %199 = vector.broadcast %198 : vector<8x16x1xf32> to vector<8x16x16xf32>
    %200 = arith.subf %196, %199 : vector<8x16x16xf32>
    %201 = math.exp %200 : vector<8x16x16xf32>
    %cst_43 = arith.constant dense<0.000000e+00> : vector<8x16xf32>
    %202 = vector.multi_reduction <add>, %201, %cst_43 [2] : vector<8x16x16xf32> to vector<8x16xf32>
    %203 = vector.shape_cast %202 : vector<8x16xf32> to vector<8x16x1xf32>
    %204 = tpu.reciprocal %203 {approx = true} : vector<8x16x1xf32> -> vector<8x16x1xf32>
    %205 = vector.broadcast %204 : vector<8x16x1xf32> to vector<8x16x16xf32>
    %206 = arith.mulf %201, %205 : vector<8x16x16xf32>
    "tpu.trace_start"() <{level = 10 : i32, message = "hqk,hke->hqe"}> : () -> ()
    %cst_44 = arith.constant dense<0.000000e+00> : vector<8x16x4xf32>
    %207 = tpu.matmul %206, %190, %cst_44 {dimension_numbers = #tpu.dot_dimension_numbers<[2], [1], [1], [2], [0, 0, 0, 1, 1, 2], [0], [0]>} : vector<8x16x16xf32>, vector<8x16x4xf32>, vector<8x16x4xf32> -> vector<8x16x4xf32>
    "tpu.trace_stop"() : () -> ()
    %208 = vector.extract_strided_slice %207 {offsets = [0, 0, 0], sizes = [1, 16, 4], strides = [1, 1, 1]} : vector<8x16x4xf32> to vector<1x16x4xf32>
    %209 = vector.shape_cast %208 : vector<1x16x4xf32> to vector<16x4xf32>
    %210 = vector.extract_strided_slice %207 {offsets = [1, 0, 0], sizes = [1, 16, 4], strides = [1, 1, 1]} : vector<8x16x4xf32> to vector<1x16x4xf32>
    %211 = vector.shape_cast %210 : vector<1x16x4xf32> to vector<16x4xf32>
    %212 = vector.extract_strided_slice %207 {offsets = [2, 0, 0], sizes = [1, 16, 4], strides = [1, 1, 1]} : vector<8x16x4xf32> to vector<1x16x4xf32>
    %213 = vector.shape_cast %212 : vector<1x16x4xf32> to vector<16x4xf32>
    %214 = vector.extract_strided_slice %207 {offsets = [3, 0, 0], sizes = [1, 16, 4], strides = [1, 1, 1]} : vector<8x16x4xf32> to vector<1x16x4xf32>
    %215 = vector.shape_cast %214 : vector<1x16x4xf32> to vector<16x4xf32>
    %216 = vector.extract_strided_slice %207 {offsets = [4, 0, 0], sizes = [1, 16, 4], strides = [1, 1, 1]} : vector<8x16x4xf32> to vector<1x16x4xf32>
    %217 = vector.shape_cast %216 : vector<1x16x4xf32> to vector<16x4xf32>
    %218 = vector.extract_strided_slice %207 {offsets = [5, 0, 0], sizes = [1, 16, 4], strides = [1, 1, 1]} : vector<8x16x4xf32> to vector<1x16x4xf32>
    %219 = vector.shape_cast %218 : vector<1x16x4xf32> to vector<16x4xf32>
    %220 = vector.extract_strided_slice %207 {offsets = [6, 0, 0], sizes = [1, 16, 4], strides = [1, 1, 1]} : vector<8x16x4xf32> to vector<1x16x4xf32>
    %221 = vector.shape_cast %220 : vector<1x16x4xf32> to vector<16x4xf32>
    %222 = vector.extract_strided_slice %207 {offsets = [7, 0, 0], sizes = [1, 16, 4], strides = [1, 1, 1]} : vector<8x16x4xf32> to vector<1x16x4xf32>
    %223 = vector.shape_cast %222 : vector<1x16x4xf32> to vector<16x4xf32>
    %224 = tpu.concatenate %209, %211, %213, %215, %217, %219, %221, %223 in 1 : vector<16x4xf32>, vector<16x4xf32>, vector<16x4xf32>, vector<16x4xf32>, vector<16x4xf32>, vector<16x4xf32>, vector<16x4xf32>, vector<16x4xf32> -> vector<16x32xf32>
    %cst_45 = arith.constant dense<0.000000e+00> : vector<16x32xf32>
    %225 = tpu.matmul %224, %8, %cst_45 {dimension_numbers = #tpu.dot_dimension_numbers<[1], [0], [0], [1], [0, 0, 1, 1], [], []>} : vector<16x32xf32>, vector<32x32xf32>, vector<16x32xf32> -> vector<16x32xf32>
    %226 = vector.broadcast %14 : vector<1x32xf32> to vector<16x32xf32>
    %227 = arith.addf %225, %226 : vector<16x32xf32>
    %228 = arith.addf %227, %1 : vector<16x32xf32>
    %cst_46 = arith.constant dense<0.000000e+00> : vector<16xf32>
    %229 = vector.multi_reduction <add>, %228, %cst_46 [1] : vector<16x32xf32> to vector<16xf32>
    %230 = vector.shape_cast %229 : vector<16xf32> to vector<16x1xf32>
    %cst_47 = arith.constant 3.200000e+01 : f32
    %231 = vector.broadcast %cst_47 : f32 to vector<16x1xf32>
    %232 = arith.divf %230, %231 : vector<16x1xf32>
    %233 = vector.broadcast %232 : vector<16x1xf32> to vector<16x32xf32>
    %234 = arith.subf %228, %233 : vector<16x32xf32>
    %235 = arith.mulf %234, %234 : vector<16x32xf32>
    %cst_48 = arith.constant dense<0.000000e+00> : vector<16xf32>
    %236 = vector.multi_reduction <add>, %235, %cst_48 [1] : vector<16x32xf32> to vector<16xf32>
    %237 = vector.shape_cast %236 : vector<16xf32> to vector<16x1xf32>
    %cst_49 = arith.constant 3.200000e+01 : f32
    %238 = vector.broadcast %cst_49 : f32 to vector<16x1xf32>
    %239 = arith.divf %237, %238 : vector<16x1xf32>
    %240 = vector.broadcast %232 : vector<16x1xf32> to vector<16x32xf32>
    %241 = arith.subf %228, %240 : vector<16x32xf32>
    %cst_50 = arith.constant 9.99999974E-6 : f32
    %242 = vector.broadcast %cst_50 : f32 to vector<16x1xf32>
    %243 = arith.addf %239, %242 : vector<16x1xf32>
    %244 = math.rsqrt %243 : vector<16x1xf32>
    %245 = vector.broadcast %244 : vector<16x1xf32> to vector<16x32xf32>
    %246 = arith.mulf %241, %245 : vector<16x32xf32>
    %247 = vector.broadcast %15 : vector<1x32xf32> to vector<16x32xf32>
    %248 = arith.mulf %246, %247 : vector<16x32xf32>
    %249 = vector.broadcast %16 : vector<1x32xf32> to vector<16x32xf32>
    %250 = arith.addf %248, %249 : vector<16x32xf32>
    %cst_51 = arith.constant dense<0.000000e+00> : vector<16x128xf32>
    %251 = tpu.matmul %250, %9, %cst_51 {dimension_numbers = #tpu.dot_dimension_numbers<[1], [0], [0], [1], [0, 0, 1, 1], [], []>} : vector<16x32xf32>, vector<32x128xf32>, vector<16x128xf32> -> vector<16x128xf32>
    %252 = vector.broadcast %17 : vector<1x128xf32> to vector<16x128xf32>
    %253 = arith.addf %251, %252 : vector<16x128xf32>
    %cst_52 = arith.constant 0.000000e+00 : f32
    %254 = vector.broadcast %cst_52 : f32 to vector<16x128xf32>
    %255 = arith.maximumf %253, %254 : vector<16x128xf32>
    %cst_53 = arith.constant dense<0.000000e+00> : vector<16x32xf32>
    %256 = tpu.matmul %255, %10, %cst_53 {dimension_numbers = #tpu.dot_dimension_numbers<[1], [0], [0], [1], [0, 0, 1, 1], [], []>} : vector<16x128xf32>, vector<128x32xf32>, vector<16x32xf32> -> vector<16x32xf32>
    %257 = vector.broadcast %18 : vector<1x32xf32> to vector<16x32xf32>
    %258 = arith.addf %256, %257 : vector<16x32xf32>
    %259 = arith.addf %258, %250 : vector<16x32xf32>
    %cst_54 = arith.constant dense<0.000000e+00> : vector<16xf32>
    %260 = vector.multi_reduction <add>, %259, %cst_54 [1] : vector<16x32xf32> to vector<16xf32>
    %261 = vector.shape_cast %260 : vector<16xf32> to vector<16x1xf32>
    %cst_55 = arith.constant 3.200000e+01 : f32
    %262 = vector.broadcast %cst_55 : f32 to vector<16x1xf32>
    %263 = arith.divf %261, %262 : vector<16x1xf32>
    %264 = vector.broadcast %263 : vector<16x1xf32> to vector<16x32xf32>
    %265 = arith.subf %259, %264 : vector<16x32xf32>
    %266 = arith.mulf %265, %265 : vector<16x32xf32>
    %cst_56 = arith.constant dense<0.000000e+00> : vector<16xf32>
    %267 = vector.multi_reduction <add>, %266, %cst_56 [1] : vector<16x32xf32> to vector<16xf32>
    %268 = vector.shape_cast %267 : vector<16xf32> to vector<16x1xf32>
    %cst_57 = arith.constant 3.200000e+01 : f32
    %269 = vector.broadcast %cst_57 : f32 to vector<16x1xf32>
    %270 = arith.divf %268, %269 : vector<16x1xf32>
    %271 = vector.broadcast %263 : vector<16x1xf32> to vector<16x32xf32>
    %272 = arith.subf %259, %271 : vector<16x32xf32>
    %cst_58 = arith.constant 9.99999974E-6 : f32
    %273 = vector.broadcast %cst_58 : f32 to vector<16x1xf32>
    %274 = arith.addf %270, %273 : vector<16x1xf32>
    %275 = math.rsqrt %274 : vector<16x1xf32>
    %276 = vector.broadcast %275 : vector<16x1xf32> to vector<16x32xf32>
    %277 = arith.mulf %272, %276 : vector<16x32xf32>
    %278 = vector.broadcast %19 : vector<1x32xf32> to vector<16x32xf32>
    %279 = arith.mulf %277, %278 : vector<16x32xf32>
    %280 = vector.broadcast %20 : vector<1x32xf32> to vector<16x32xf32>
    %281 = arith.addf %279, %280 : vector<16x32xf32>
    %cst_59 = arith.constant 0.000000e+00 : f32
    %282 = vector.broadcast %cst_59 : f32 to vector<16x96xf32>
    %283 = tpu.concatenate %281, %282 in 1 : vector<16x32xf32>, vector<16x96xf32> -> vector<16x128xf32>
    %c0_60 = arith.constant 0 : index
    %c0_61 = arith.constant 0 : index
    %284 = vector.load %arg3[%c0_60, %c0_61] : memref<16x128xf32, #tpu.memory_space<vmem>>, vector<16x128xf32>
    tpu.vector_store %arg3[%c0_60, %c0_61], %283 {strides = array<i32>} : memref<16x128xf32, #tpu.memory_space<vmem>>, vector<16x128xf32>,
    return
  }
  func.func @transform_0(%arg0: i32) -> (i32, i32) {
    %c0_i32 = arith.constant 0 : i32
    %c0_i32_0 = arith.constant 0 : i32
    %c0_i32_1 = arith.constant 0 : i32
    return %c0_i32, %c0_i32_0 : i32, i32
  }
  func.func @transform_1(%arg0: i32) -> (i32, i32) {
    %c0_i32 = arith.constant 0 : i32
    %c0_i32_0 = arith.constant 0 : i32
    %c0_i32_1 = arith.constant 0 : i32
    return %c0_i32, %c0_i32_0 : i32, i32
  }
  func.func @transform_2(%arg0: i32) -> (i32, i32) {
    %c0_i32 = arith.constant 0 : i32
    %c0_i32_0 = arith.constant 0 : i32
    %c0_i32_1 = arith.constant 0 : i32
    return %c0_i32, %c0_i32_0 : i32, i32
  }
}

</mosaic_0001>

<bundles_post_ra>
// kernel: tpu_custom_call.1
= control target key start
LH: loop header
LB: loop body
LE: loop exit
PB: predicated region body
PF: predicated region fallthrough
CT: control target
= control target key end

     0   :  { %7 = vsyncpa [#allocation3], 0  ;;  %s6075_s0 = inlined_call_operand.hbm [shape: f32[16,128], index: 0, kind: input, shape index: {}]   ;;  %s6076_s1 = inlined_call_operand.hbm [shape: f32[240,128], index: 1, kind: input, shape index: {}]   ;;  %s6077_s2 = inlined_call_operand.hbm [shape: f32[16,128], index: 2, kind: output, shape index: {}]  }
   0x1   :  { %8 = vsyncpa [#allocation6], 0 }
   0x2   :  { %9 = vsyncpa [#allocation4], 0  ;;  %s5130_s9 = smov [#allocation2]  }
   0x3   :  { %s15_s10 = sshll.u32 %s5130_s9, 4  ;;  %s16_s10 = int_to_ptr.vmem [resolvable:$true] %s15_s10 }
   0x4   :  { %s5072_s11 = scalar_lea.vmem %s16_s10, 256  ;;  %p5077_p1 = scmp.lt.s32.totalorder %s16_s10, %s16_s10 }
   0x5   :  { %p5073_p0 = scmp.ne.s32.totalorder %s16_s10, %s5072_s11  ;;  %p5078_p2 = scmp.lt.s32.totalorder %s5072_s11, %s5072_s11 }
   0x7   :  { %p5079_p3 = por %p5078_p2, %p5077_p1 }
   0x9   :  { %p5080_p4 = pnand %p5079_p3, %p5073_p0 }
   0xb   :  { %5083 = shalt.err (!%p5080_p4)
}
   0xc   :  { %s5131_s12 = smov 128   ;;  %s5132_s13 = smov 8  }
   0xd   :  { %21 = dma.hbm_to_vmem [thread:$0]  %s6075_s0, 256, %s16_s10, [#allocation3], %s5131_s12, %s5131_s12, %s5132_s13  }
   0xe   :  { %s5133_s16 = smov [#allocation5]  }
   0xf   :  { %s27_s17 = sshll.u32 %s5133_s16, 4  ;;  %s28_s17 = int_to_ptr.vmem [resolvable:$true] %s27_s17 }
  0x10   :  { %s5092_s18 = scalar_lea.vmem %s28_s17, 3840  ;;  %p5097_p6 = scmp.lt.s32.totalorder %s28_s17, %s28_s17 }
  0x11   :  { %p5093_p5 = scmp.ne.s32.totalorder %s28_s17, %s5092_s18  ;;  %p5098_p7 = scmp.lt.s32.totalorder %s5092_s18, %s5092_s18 }
  0x13   :  { %p5099_p8 = por %p5098_p7, %p5097_p6 }
  0x15   :  { %p5100_p9 = pnand %p5099_p8, %p5093_p5 }
  0x17   :  { %5103 = shalt.err (!%p5100_p9)
}
  0x18   :  { %33 = dma.hbm_to_vmem [thread:$0]  %s6076_s1, 3840, %s28_s17, [#allocation6], %s5131_s12, %s5131_s12, %s5132_s13  }
  0x19   :  { %5124 = dma.done.wait [#allocation3], 256  }
  0x1a   :  { %5125 = vsyncadd [#allocation3], 4294967040 }
  0x1b   :  { %5126 = dma.done.wait [#allocation6], 3840  }
  0x1c   :  { %5127 = vsyncadd [#allocation6], 4294963456  ;;  %vm80_vm0 = vcmask 261120   ;;  %v45_v0 = vld [vmem:[#allocation5 + $0x18] sm:$0xff]  ;;  %v44_v1 = vld [vmem:[#allocation5 + $0x10] sm:$0xff]  ;;  %vm196_vm1 = vcmask 31744  }
  0x1d   :  { %4568 = vmatprep.subr.mxu1 %v45_v0  ;;  %v5179_v2 = vld [vmem:[#allocation2] sm:$0xff]  ;;  %v43_v3 = vld [vmem:[#allocation5 + $0x8] sm:$0xff]  ;;  %v42_v4 = vld [vmem:[#allocation5] sm:$0xff]  ;;  %s5134_s0 = smov 120   ;;  %s5135_s1 = smov 124   ;;  %vm927_vm2 = vcmask 130048  }
  0x1e   :  { %4569 = vmatpush3.msra.mxu1 %v45_v0  ;;  %4576 = vmatprep.mubr.msk.f32.mxu1 %vm80_vm0, %v5179_v2  ;;  %v5183_v5 = vld [vmem:[#allocation2 + $0x8] sm:$0xff]  ;;  %s5136_s21 = smov 116   ;;  %s5137_s22 = smov 108   ;;  %vm1858_vm3 = vcmask 64512   ;;  %vm1861_vm4 = vcmask 97280   ;;  %vm1866_vm5 = vcmask 162816  }
  0x1f   :  { %4570 = vmatprep.subr.mxu1 %v44_v1  ;;  %s5138_s23 = smov 112   ;;  %s5139_s24 = smov 100   ;;  %vm1872_vm6 = vcmask 228352   ;;  %vm1869_vm7 = vcmask 195584  }
  0x20   :  { %4571 = vmatpush3.msra.mxu1 %v44_v1  ;;  %s5140_s25 = smov 104   ;;  %s5141_s26 = smov 96  }
  0x21   :  { %4572 = vmatprep.subr.mxu1 %v43_v3  ;;  %s5142_s27 = smov 64   ;;  %s5143_s28 = smov 4  }
  0x22   :  { %4573 = vmatpush3.msra.mxu1 %v43_v3  ;;  %s5144_s29 = smov 12   ;;  %s5145_s30 = smov 20  }
  0x23   :  { %4574 = vmatprep.subr.mxu1 %v42_v4  ;;  %s5146_s3 = smov 16   ;;  %s5147_s4 = smov 28  }
  0x24   :  { %4575 = vmatpush3.msra.mxu1 %v42_v4  ;;  %s5148_s5 = smov 24   ;;  %s5149_s6 = smov 32  }
  0x25   :  { %4577 = vmatmul.mubr.msk.f32.vlgmr.msra.gmra.mxu1 %vm80_vm0, %v5183_v5  ;;  %s5150_s7 = smov 48   ;;  %s5151_s8 = smov [#allocation7]  }
  0x26   :  { %s4255_s9 = sshll.u32 %s5151_s8, 4  ;;  %s4256_s9 = int_to_ptr.vmem [resolvable:$true] %s4255_s9 }
  0x27   :  { %s5104_s10 = scalar_lea.vmem %s4256_s9, 256  ;;  %p5109_p11 = scmp.lt.s32.totalorder %s4256_s9, %s4256_s9 }
  0x28   :  { %p5105_p10 = scmp.ne.s32.totalorder %s4256_s9, %s5104_s10  ;;  %p5110_p12 = scmp.lt.s32.totalorder %s5104_s10, %s5104_s10 }
  0x2a   :  { %p5111_p13 = por %p5110_p12, %p5109_p11 }
  0x2c   :  { %p5112_p0 = pnand %p5111_p13, %p5105_p10 }
  0xe5   :  { %v5187_v6 = vpop.f32.mrf.mxu1 }
  0xe6   :  { %170 = vrot.lane.b32.xlu1 %v5187_v6, %s5134_s0  ;;  %166 = vrot.lane.b32.xlu0 %v5187_v6, %s5135_s1 }
  0xe7   :  { %v153_v7 = vpop.f32.mrf.mxu1 }
  0xe8   :  { %4583 = vmatprep.mubr.msk.f32.mxu1 %vm196_vm1, %v153_v7 }
  0xea   :  { %174 = vrot.lane.b32.xlu1 %v5187_v6, %s5136_s21  ;;  %164 = vrot.lane.b32.xlu0 %v153_v7, %s5135_s1 }
  0xee   :  { %172 = vrot.lane.b32.xlu1 %v153_v7, %s5136_s21  ;;  %168 = vrot.lane.b32.xlu0 %v153_v7, %s5134_s0 }
  0xf2   :  { %182 = vrot.lane.b32.xlu1 %v5187_v6, %s5137_s22  ;;  %178 = vrot.lane.b32.xlu0 %v5187_v6, %s5138_s23 }
  0xf6   :  { %180 = vrot.lane.b32.xlu1 %v153_v7, %s5137_s22  ;;  %176 = vrot.lane.b32.xlu0 %v153_v7, %s5138_s23 }
  0xfa   :  { %190 = vrot.lane.b32.xlu1 %v5187_v6, %s5139_s24  ;;  %186 = vrot.lane.b32.xlu0 %v5187_v6, %s5140_s25 }
  0xfe   :  { %188 = vrot.lane.b32.xlu1 %v153_v7, %s5139_s24  ;;  %184 = vrot.lane.b32.xlu0 %v153_v7, %s5140_s25 }
 0x102   :  { %192 = vrot.lane.b32.xlu1 %v153_v7, %s5141_s26  ;;  %194 = vrot.lane.b32.xlu0 %v5187_v6, %s5141_s26 }
 0x158   :  { %v5214_v8 = vpop.permute.xlu1 %170  ;;  %v167_v9 = vpop.permute.xlu0 %166 }
 0x159   :  { %282 = vrot.lane.b32.xlu0 %v167_v9, %s5141_s26 }
 0x15c   :  { %v5217_v10 = vpop.permute.xlu1 %174  ;;  %v165_v11 = vpop.permute.xlu0 %164 }
 0x15d   :  { %369 = vrot.lane.b32.xlu0 %v5214_v8, %s5141_s26  ;;  %280 = vrot.lane.b32.xlu1 %v165_v11, %s5141_s26 }
 0x160   :  { %v173_v12 = vpop.permute.xlu1 %172  ;;  %v169_v13 = vpop.permute.xlu0 %168 }
 0x161   :  { %4604 = vmatprep.mubr.msk.f32.mxu0 %vm196_vm1, %v173_v12  ;;  %456 = vrot.lane.b32.xlu1 %v5217_v10, %s5141_s26 }
 0x162   :  { %367 = vrot.lane.b32.xlu0 %v169_v13, %s5141_s26 }
 0x164   :  { %v5226_v14 = vpop.permute.xlu1 %182  ;;  %v5228_v15 = vpop.permute.xlu0 %178 }
 0x165   :  { %454 = vrot.lane.b32.xlu1 %v173_v12, %s5141_s26 }
 0x166   :  { %543 = vrot.lane.b32.xlu0 %v5228_v15, %s5141_s26 }
 0x168   :  { %v5233_v16 = vpop.permute.xlu1 %180  ;;  %v5235_v17 = vpop.permute.xlu0 %176 }
 0x169   :  { %630 = vrot.lane.b32.xlu1 %v5226_v14, %s5141_s26 }
 0x16a   :  { %541 = vrot.lane.b32.xlu0 %v5235_v17, %s5141_s26 }
 0x16c   :  { %v5241_v18 = vpop.permute.xlu1 %190  ;;  %v5243_v19 = vpop.permute.xlu0 %186 }
 0x16d   :  { %628 = vrot.lane.b32.xlu1 %v5233_v16, %s5141_s26 }
 0x16e   :  { %717 = vrot.lane.b32.xlu0 %v5243_v19, %s5141_s26 }
 0x170   :  { %v5249_v20 = vpop.permute.xlu1 %188  ;;  %v5251_v21 = vpop.permute.xlu0 %184 }
 0x171   :  { %804 = vrot.lane.b32.xlu1 %v5241_v18, %s5141_s26 }
 0x172   :  { %715 = vrot.lane.b32.xlu0 %v5251_v21, %s5141_s26 }
 0x174   :  { %v195_v22 = vpop.permute.xlu0 %194  ;;  %v193_v23 = vpop.permute.xlu1 %192 }
 0x175   :  { %802 = vrot.lane.b32.xlu1 %v5249_v20, %s5141_s26  ;;  %4579 = vmatprep.subr.msk.mxu1 %vm196_vm1, %v195_v22 }
 0x176   :  { %905 = vrot.lane.b32.xlu0 %v5179_v2, %s5142_s27  ;;  %4580 = vmatpush3.xpose.msk.msra.mxu1 %vm196_vm1, %v195_v22 }
 0x177   :  { %4581 = vmatprep.subr.msk.mxu1 %vm196_vm1, %v193_v23 }
 0x179   :  { %907 = vrot.lane.b32.xlu1 %v5183_v5, %s5142_s27 }
 0x17a   :  { %1104 = vrot.lane.b32.xlu0 %v153_v7, %s5142_s27  ;;  %4582 = vmatpush3.xpose.msk.msra.mxu1 %vm196_vm1, %v193_v23 }
 0x17d   :  { %1106 = vrot.lane.b32.xlu1 %v5187_v6, %s5142_s27  ;;  %4584 = vmatmul.mubr.msk.f32.vlgmr.msra.gmra.mxu1 %vm196_vm1, %v5187_v6 }
 0x17e   :  { %1280 = vrot.lane.b32.xlu0 %v5214_v8, %s5142_s27  ;;  %4590 = vmatprep.mubr.msk.f32.mxu1 %vm196_vm1, %v165_v11 }
 0x181   :  { %1193 = vrot.lane.b32.xlu1 %v167_v9, %s5142_s27 }
 0x182   :  { %1454 = vrot.lane.b32.xlu0 %v5228_v15, %s5142_s27 }
 0x185   :  { %1367 = vrot.lane.b32.xlu1 %v5217_v10, %s5142_s27 }
 0x186   :  { %1278 = vrot.lane.b32.xlu0 %v169_v13, %s5142_s27 }
 0x189   :  { %1541 = vrot.lane.b32.xlu1 %v5226_v14, %s5142_s27 }
 0x18d   :  { %1191 = vrot.lane.b32.xlu1 %v165_v11, %s5142_s27 }
 0x191   :  { %1365 = vrot.lane.b32.xlu1 %v173_v12, %s5142_s27 }
 0x1cb   :  { %v283_v24 = vpop.permute.xlu0 %282 }
 0x1cc   :  { %4586 = vmatprep.subr.msk.mxu1 %vm196_vm1, %v283_v24 }
 0x1cd   :  { %4587 = vmatpush3.xpose.msk.msra.mxu1 %vm196_vm1, %v283_v24 }
 0x1cf   :  { %v281_v25 = vpop.permute.xlu1 %280  ;;  %v370_v26 = vpop.permute.xlu0 %369 }
 0x1d0   :  { %4588 = vmatprep.subr.msk.mxu1 %vm196_vm1, %v281_v25 }
 0x1d1   :  { %4589 = vmatpush3.xpose.msk.msra.mxu1 %vm196_vm1, %v281_v25 }
 0x1d2   :  { %4593 = vmatprep.subr.msk.mxu1 %vm196_vm1, %v370_v26 }
 0x1d3   :  { %v457_v27 = vpop.permute.xlu1 %456 }
 0x1d4   :  { %v368_v28 = vpop.permute.xlu0 %367  ;;  %4591 = vmatmul.mubr.msk.f32.vlgmr.msra.gmra.mxu1 %vm196_vm1, %v167_v9  ;;  %4600 = vmatprep.subr.msk.mxu0 %vm196_vm1, %v457_v27 }
 0x1d5   :  { %4594 = vmatpush3.xpose.msk.msra.mxu1 %vm196_vm1, %v370_v26  ;;  %4597 = vmatprep.mubr.msk.f32.mxu1 %vm196_vm1, %v169_v13 }
 0x1d6   :  { %4601 = vmatpush3.xpose.msk.msra.mxu0 %vm196_vm1, %v457_v27  ;;  %4595 = vmatprep.subr.msk.mxu1 %vm196_vm1, %v368_v28 }
 0x1d7   :  { %v455_v29 = vpop.permute.xlu1 %454 }
 0x1d8   :  { %v544_v30 = vpop.permute.xlu0 %543  ;;  %4602 = vmatprep.subr.msk.mxu0 %vm196_vm1, %v455_v29 }
 0x1d9   :  { %4596 = vmatpush3.xpose.msk.msra.mxu1 %vm196_vm1, %v368_v28 }
 0x1da   :  { %4603 = vmatpush3.xpose.msk.msra.mxu0 %vm196_vm1, %v455_v29  ;;  %4607 = vmatprep.subr.msk.mxu1 %vm196_vm1, %v544_v30 }
 0x1db   :  { %v631_v31 = vpop.permute.xlu1 %630 }
 0x1dc   :  { %v542_v32 = vpop.permute.xlu0 %541  ;;  %4598 = vmatmul.mubr.msk.f32.vlgmr.msra.gmra.mxu1 %vm196_vm1, %v5214_v8  ;;  %4614 = vmatprep.subr.msk.mxu0 %vm196_vm1, %v631_v31 }
 0x1dd   :  { %4605 = vmatmul.mubr.msk.f32.vlgmr.msra.gmra.mxu0 %vm196_vm1, %v5217_v10  ;;  %4608 = vmatpush3.xpose.msk.msra.mxu1 %vm196_vm1, %v544_v30 }
 0x1de   :  { %4611 = vmatprep.mubr.msk.f32.mxu1 %vm196_vm1, %v5235_v17  ;;  %4615 = vmatpush3.xpose.msk.msra.mxu0 %vm196_vm1, %v631_v31 }
 0x1df   :  { %4618 = vmatprep.mubr.msk.f32.mxu0 %vm196_vm1, %v5233_v16  ;;  %4609 = vmatprep.subr.msk.mxu1 %vm196_vm1, %v542_v32  ;;  %v629_v33 = vpop.permute.xlu1 %628 }
 0x1e0   :  { %v718_v34 = vpop.permute.xlu0 %717  ;;  %4616 = vmatprep.subr.msk.mxu0 %vm196_vm1, %v629_v33 }
 0x1e1   :  { %4610 = vmatpush3.xpose.msk.msra.mxu1 %vm196_vm1, %v542_v32 }
 0x1e2   :  { %4617 = vmatpush3.xpose.msk.msra.mxu0 %vm196_vm1, %v629_v33  ;;  %4621 = vmatprep.subr.msk.mxu1 %vm196_vm1, %v718_v34 }
 0x1e3   :  { %v805_v35 = vpop.permute.xlu1 %804 }
 0x1e4   :  { %v716_v36 = vpop.permute.xlu0 %715  ;;  %4612 = vmatmul.mubr.msk.f32.vlgmr.msra.gmra.mxu1 %vm196_vm1, %v5228_v15  ;;  %4628 = vmatprep.subr.msk.mxu0 %vm196_vm1, %v805_v35 }
 0x1e5   :  { %4619 = vmatmul.mubr.msk.f32.vlgmr.msra.gmra.mxu0 %vm196_vm1, %v5226_v14  ;;  %4622 = vmatpush3.xpose.msk.msra.mxu1 %vm196_vm1, %v718_v34 }
 0x1e6   :  { %4625 = vmatprep.mubr.msk.f32.mxu1 %vm196_vm1, %v5251_v21  ;;  %4629 = vmatpush3.xpose.msk.msra.mxu0 %vm196_vm1, %v805_v35 }
 0x1e7   :  { %4632 = vmatprep.mubr.msk.f32.mxu0 %vm196_vm1, %v5249_v20  ;;  %4623 = vmatprep.subr.msk.mxu1 %vm196_vm1, %v716_v36  ;;  %v803_v37 = vpop.permute.xlu1 %802 }
 0x1e8   :  { %v5328_v38 = vpop.permute.xlu0 %905  ;;  %4630 = vmatprep.subr.msk.mxu0 %vm196_vm1, %v803_v37 }
 0x1e9   :  { %4624 = vmatpush3.xpose.msk.msra.mxu1 %vm196_vm1, %v716_v36 }
 0x1ea   :  { %4631 = vmatpush3.xpose.msk.msra.mxu0 %vm196_vm1, %v803_v37 }
 0x1eb   :  { %v5333_v39 = vpop.permute.xlu1 %907 }
 0x1ec   :  { %v1105_v40 = vpop.permute.xlu0 %1104  ;;  %4626 = vmatmul.mubr.msk.f32.vlgmr.msra.gmra.mxu1 %vm196_vm1, %v5243_v19 }
 0x1ed   :  { %4633 = vmatmul.mubr.msk.f32.vlgmr.msra.gmra.mxu0 %vm196_vm1, %v5241_v18 }
 0x1ef   :  { %v1107_v41 = vpop.permute.xlu1 %1106 }
 0x1f0   :  { %v1281_v42 = vpop.permute.xlu0 %1280  ;;  %4635 = vmatprep.subr.mxu1 %v1107_v41 }
 0x1f1   :  { %4649 = vmatprep.subr.mxu0 %v1281_v42  ;;  %4636 = vmatpush3.msra.mxu1 %v1107_v41 }
 0x1f2   :  { %4650 = vmatpush3.msra.mxu0 %v1281_v42  ;;  %4637 = vmatprep.subr.mxu1 %v1105_v40 }
 0x1f3   :  { %v5339_v43 = vpop.permute.xlu1 %1193  ;;  %4638 = vmatpush3.msra.mxu1 %v1105_v40 }
 0x1f4   :  { %v5341_v44 = vpop.permute.xlu0 %1454  ;;  %4642 = vmatprep.subr.mxu1 %v5339_v43 }
 0x1f8   :  { %v1279_v45 = vpop.permute.xlu0 %1278 }
 0x1f9   :  { %4651 = vmatprep.subr.mxu0 %v1279_v45 }
 0x1fa   :  { %4652 = vmatpush3.msra.mxu0 %v1279_v45 }
 0x1fb   :  { %4663 = vmatprep.subr.mxu0 %v5341_v44 }
 0x23d   :  { %v4585_v46 = vpop.f32.mrf.mxu1 }
 0x23e   :  { %v890_v47 = vmul.f32 0.5, %v4585_v46 }
 0x23f   :  { %v271_v48 = vpop.f32.mrf.mxu1 }
 0x240   :  { %v889_v49 = vmul.f32 0.5, %v271_v48  ;;  %v5346_v50 = vadd.f32 %v5333_v39, %v890_v47 }
 0x242   :  { %v931_v51 = vsel %vm927_vm2, %v5346_v50, -inf  ;;  %v5351_v52 = vadd.f32 %v5328_v38, %v889_v49 }
 0x243   :  { %932 = vmax.xlane.f32.xlu1 %v931_v51 }
 0x244   :  { %v928_v53 = vsel %vm927_vm2, %v5351_v52, -inf }
 0x245   :  { %929 = vmax.xlane.f32.xlu0 %v928_v53 }
 0x294   :  { %v4592_v54 = vpop.f32.mrf.mxu1 }
 0x295   :  { %v892_v55 = vmul.f32 0.5, %v4592_v54  ;;  %v5420_v54 = vpop.permute.xlu1 %1367 }
 0x296   :  { %v358_v58 = vpop.f32.mrf.mxu1 }
 0x297   :  { %v5356_v56 = vadd.f32 %v5333_v39, %v892_v55  ;;  %v891_v61 = vmul.f32 0.5, %v358_v58 }
 0x299   :  { %v937_v57 = vsel %vm927_vm2, %v5356_v56, -inf  ;;  %v5369_v7 = vadd.f32 %v5328_v38, %v891_v61  ;;  %v5424_v55 = vpop.permute.xlu1 %1541 }
 0x29a   :  { %938 = vmax.xlane.f32.xlu0 %v937_v57 }
 0x29b   :  { %v934_v13 = vsel %vm927_vm2, %v5369_v7, -inf }
 0x29c   :  { %v4599_v59 = vpop.f32.mrf.mxu1 }
 0x29d   :  { %v4606_v60 = vpop.f32.mrf.mxu0  ;;  %v894_v4 = vmul.f32 0.5, %v4599_v59  ;;  %v5426_v57 = vpop.permute.xlu1 %1191 }
 0x29e   :  { %v896_v62 = vmul.f32 0.5, %v4606_v60  ;;  %v445_v63 = vpop.f32.mrf.mxu1 }
 0x29f   :  { %v532_v0 = vpop.f32.mrf.mxu0  ;;  %v893_v1 = vmul.f32 0.5, %v445_v63  ;;  %v5379_v15 = vadd.f32 %v5333_v39, %v894_v4 }
 0x2a0   :  { %v895_v2 = vmul.f32 0.5, %v532_v0  ;;  %v5361_v3 = vadd.f32 %v5333_v39, %v896_v62 }
 0x2a1   :  { %v5374_v10 = vadd.f32 %v5328_v38, %v893_v1  ;;  %v943_v27 = vsel %vm927_vm2, %v5379_v15, -inf  ;;  %v5430_v58 = vpop.permute.xlu1 %1365 }
 0x2a2   :  { %v949_v5 = vsel %vm927_vm2, %v5361_v3, -inf  ;;  %v5366_v6 = vadd.f32 %v5328_v38, %v895_v2 }
 0x2a3   :  { %950 = vmax.xlane.f32.xlu0 %v949_v5  ;;  %v940_v25 = vsel %vm927_vm2, %v5374_v10, -inf }
 0x2a4   :  { %v946_v8 = vsel %vm927_vm2, %v5366_v6, -inf  ;;  %v4613_v9 = vpop.f32.mrf.mxu1 }
 0x2a5   :  { %v4620_v11 = vpop.f32.mrf.mxu0  ;;  %947 = vmax.xlane.f32.xlu1 %v946_v8  ;;  %v898_v26 = vmul.f32 0.5, %v4613_v9 }
 0x2a6   :  { %v900_v12 = vmul.f32 0.5, %v4620_v11  ;;  %v619_v14 = vpop.f32.mrf.mxu1 }
 0x2a7   :  { %v706_v22 = vpop.f32.mrf.mxu0  ;;  %935 = vmax.xlane.f32.xlu0 %v934_v13  ;;  %v897_v24 = vmul.f32 0.5, %v619_v14  ;;  %v5399_v35 = vadd.f32 %v5333_v39, %v898_v26 }
 0x2a8   :  { %v899_v23 = vmul.f32 0.5, %v706_v22  ;;  %v5389_v29 = vadd.f32 %v5333_v39, %v900_v12 }
 0x2a9   :  { %941 = vmax.xlane.f32.xlu1 %v940_v25  ;;  %v5394_v31 = vadd.f32 %v5328_v38, %v897_v24  ;;  %v955_v45 = vsel %vm927_vm2, %v5399_v35, -inf }
 0x2aa   :  { %v5386_v28 = vadd.f32 %v5328_v38, %v899_v23  ;;  %v961_v34 = vsel %vm927_vm2, %v5389_v29, -inf }
 0x2ab   :  { %944 = vmax.xlane.f32.xlu0 %v943_v27  ;;  %v952_v41 = vsel %vm927_vm2, %v5394_v31, -inf }
 0x2ac   :  { %v958_v30 = vsel %vm927_vm2, %v5386_v28, -inf  ;;  %v4627_v36 = vpop.f32.mrf.mxu1 }
 0x2ad   :  { %v4634_v32 = vpop.f32.mrf.mxu0  ;;  %959 = vmax.xlane.f32.xlu1 %v958_v30  ;;  %v902_v42 = vmul.f32 0.5, %v4627_v36 }
 0x2ae   :  { %v904_v33 = vmul.f32 0.5, %v4634_v32  ;;  %v793_v60 = vpop.f32.mrf.mxu1 }
 0x2af   :  { %v880_v37 = vpop.f32.mrf.mxu0  ;;  %962 = vmax.xlane.f32.xlu0 %v961_v34  ;;  %v5416_v51 = vadd.f32 %v5333_v39, %v902_v42  ;;  %v901_v62 = vmul.f32 0.5, %v793_v60 }
 0x2b0   :  { %v903_v40 = vmul.f32 0.5, %v880_v37  ;;  %v5409_v47 = vadd.f32 %v5333_v39, %v904_v33 }
 0x2b1   :  { %953 = vmax.xlane.f32.xlu1 %v952_v41  ;;  %v967_v53 = vsel %vm927_vm2, %v5416_v51, -inf }
 0x2b2   :  { %v5406_v46 = vadd.f32 %v5328_v38, %v903_v40  ;;  %v973_v49 = vsel %vm927_vm2, %v5409_v47, -inf }
 0x2b3   :  { %956 = vmax.xlane.f32.xlu0 %v955_v45 }
 0x2b4   :  { %v970_v48 = vsel %vm927_vm2, %v5406_v46, -inf }
 0x2b5   :  { %971 = vmax.xlane.f32.xlu1 %v970_v48 }
 0x2b7   :  { %974 = vmax.xlane.f32.xlu0 %v973_v49 }
 0x2bb   :  { %968 = vmax.xlane.f32.xlu0 %v967_v53 }
 0x2c6   :  { %1539 = vrot.lane.b32.xlu1 %v5233_v16, %s5142_s27  ;;  %v5436_v16 = vadd.f32 %v5328_v38, %v901_v62 }
 0x2c8   :  { %v964_v63 = vsel %vm927_vm2, %v5436_v16, -inf }
 0x2cc   :  { %v933_v39 = vpop.xlane.xlu1 %932 }
 0x2cd   :  { %v977_v59 = vsub.f32 %v5346_v50, %v933_v39 }
 0x2cf   :  { %v994_v61 = vmul.f32 1.442695, %v977_v59 }
 0x2d1   :  { %1452 = vrot.lane.b32.xlu0 %v5235_v17, %s5142_s27  ;;  %4915 = vpow2.f32 %v994_v61 }
 0x2d5   :  { %1628 = vrot.lane.b32.xlu0 %v5243_v19, %s5142_s27  ;;  %v930_v19 = vpop.xlane.xlu0 %929 }
 0x2d6   :  { %v976_v50 = vsub.f32 %v5351_v52, %v930_v19 }
 0x2d8   :  { %v992_v1 = vmul.f32 1.442695, %v976_v50 }
 0x2da   :  { %4917 = vpow2.f32 %v992_v1 }
 0x2de   :  { %v5440_v17 = vpop.eup %4915 }
 0x2df   :  { %v1027_v0 = vsel %vm927_vm2, %v5440_v17, 0.0 }
 0x2e7   :  { %v5447_v38 = vpop.eup %4917 }
 0x2e8   :  { %v1024_v2 = vsel %vm927_vm2, %v5447_v38, 0.0 }
 0x2ea   :  { %965 = vmax.xlane.f32.xlu1 %v964_v63 }
 0x2f4   :  { %1028 = vadd.xlane.f32.xlu0 %v1027_v0 }
 0x2fb   :  { %1715 = vrot.lane.b32.xlu1 %v5241_v18, %s5142_s27 }
 0x31f   :  { %1025 = vadd.xlane.f32.xlu1 %v1024_v2 }
 0x323   :  { %v939_v4 = vpop.xlane.xlu0 %938 }
 0x324   :  { %v979_v5 = vsub.f32 %v5356_v56, %v939_v4 }
 0x326   :  { %v998_v8 = vmul.f32 1.442695, %v979_v5 }
 0x328   :  { %4919 = vpow2.f32 %v998_v8 }
 0x32c   :  { %v951_v9 = vpop.xlane.xlu0 %950 }
 0x32d   :  { %v983_v11 = vsub.f32 %v5361_v3, %v951_v9 }
 0x32e   :  { %v948_v18 = vpop.xlane.xlu1 %947 }
 0x32f   :  { %v1006_v12 = vmul.f32 1.442695, %v983_v11  ;;  %v982_v52 = vsub.f32 %v5366_v6, %v948_v18 }
 0x330   :  { %v936_v13 = vpop.xlane.xlu0 %935 }
 0x331   :  { %4921 = vpow2.f32 %v1006_v12  ;;  %v978_v14 = vsub.f32 %v5369_v7, %v936_v13  ;;  %v1004_v23 = vmul.f32 1.442695, %v982_v52 }
 0x332   :  { %v942_v22 = vpop.xlane.xlu1 %941 }
 0x333   :  { %v996_v24 = vmul.f32 1.442695, %v978_v14  ;;  %v980_v25 = vsub.f32 %v5374_v10, %v942_v22 }
 0x334   :  { %v945_v26 = vpop.xlane.xlu0 %944 }
 0x335   :  { %v5456_v56 = vpop.eup %4919  ;;  %4923 = vpow2.f32 %v996_v24  ;;  %v981_v27 = vsub.f32 %v5379_v15, %v945_v26  ;;  %v1000_v6 = vmul.f32 1.442695, %v980_v25 }
 0x336   :  { %v960_v3 = vpop.xlane.xlu1 %959  ;;  %v1033_v30 = vsel %vm927_vm2, %v5456_v56, 0.0  ;;  %4925 = vpow2.f32 %v1004_v23 }
 0x337   :  { %v1002_v32 = vmul.f32 1.442695, %v981_v27  ;;  %v986_v7 = vsub.f32 %v5386_v28, %v960_v3  ;;  %1034 = vadd.xlane.f32.xlu0 %v1033_v30 }
 0x338   :  { %v963_v33 = vpop.xlane.xlu0 %962 }
 0x339   :  { %4927 = vpow2.f32 %v1002_v32  ;;  %v987_v10 = vsub.f32 %v5389_v29, %v963_v33  ;;  %v1012_v34 = vmul.f32 1.442695, %v986_v7 }
 0x33a   :  { %v954_v36 = vpop.xlane.xlu1 %953  ;;  %4929 = vpow2.f32 %v1000_v6 }
 0x33b   :  { %v1014_v37 = vmul.f32 1.442695, %v987_v10  ;;  %v984_v15 = vsub.f32 %v5394_v31, %v954_v36 }
 0x33c   :  { %v957_v40 = vpop.xlane.xlu0 %956 }
 0x33d   :  { %4931 = vpow2.f32 %v1014_v37  ;;  %v985_v41 = vsub.f32 %v5399_v35, %v957_v40  ;;  %v1008_v28 = vmul.f32 1.442695, %v984_v15 }
 0x33e   :  { %v5465_v42 = vpop.eup %4921  ;;  %4933 = vpow2.f32 %v1012_v34  ;;  %v972_v45 = vpop.xlane.xlu1 %971 }
 0x33f   :  { %v1010_v48 = vmul.f32 1.442695, %v985_v41  ;;  %v990_v49 = vsub.f32 %v5406_v46, %v972_v45  ;;  %v1045_v29 = vsel %vm927_vm2, %v5465_v42, 0.0 }
 0x340   :  { %v975_v53 = vpop.xlane.xlu0 %974  ;;  %1046 = vadd.xlane.f32.xlu0 %v1045_v29 }
 0x341   :  { %4935 = vpow2.f32 %v1010_v48  ;;  %v991_v31 = vsub.f32 %v5409_v47, %v975_v53  ;;  %v1020_v35 = vmul.f32 1.442695, %v990_v49 }
 0x342   :  { %v5471_v39 = vpop.eup %4923  ;;  %4937 = vpow2.f32 %v1008_v28  ;;  %v5518_v24 = vpop.permute.xlu1 %1539 }
 0x343   :  { %v1022_v59 = vmul.f32 1.442695, %v991_v31  ;;  %v1030_v60 = vsel %vm927_vm2, %v5471_v39, 0.0  ;;  %v5475_v61 = vpop.eup %4925 }
 0x344   :  { %v969_v62 = vpop.xlane.xlu0 %968  ;;  %1031 = vadd.xlane.f32.xlu1 %v1030_v60  ;;  %v1042_v19 = vsel %vm927_vm2, %v5475_v61, 0.0 }
 0x345   :  { %4939 = vpow2.f32 %v1022_v59  ;;  %v989_v46 = vsub.f32 %v5416_v51, %v969_v62 }
 0x346   :  { %v5478_v63 = vpop.eup %4927  ;;  %4941 = vpow2.f32 %v1020_v35 }
 0x347   :  { %v1018_v0 = vmul.f32 1.442695, %v989_v46  ;;  %v1039_v47 = vsel %vm927_vm2, %v5478_v63, 0.0  ;;  %v5484_v50 = vpop.eup %4929 }
 0x348   :  { %1040 = vadd.xlane.f32.xlu0 %v1039_v47  ;;  %1043 = vadd.xlane.f32.xlu1 %v1042_v19  ;;  %v1036_v4 = vsel %vm927_vm2, %v5484_v50, 0.0  ;;  %v5527_v6 = vpop.permute.xlu0 %1452 }
 0x349   :  { %4943 = vpow2.f32 %v1018_v0 }
 0x34a   :  { %v5486_v1 = vpop.eup %4931 }
 0x34b   :  { %v5488_v2 = vpop.eup %4933  ;;  %v1057_v51 = vsel %vm927_vm2, %v5486_v1, 0.0 }
 0x34c   :  { %1058 = vadd.xlane.f32.xlu0 %v1057_v51  ;;  %1037 = vadd.xlane.f32.xlu1 %v1036_v4  ;;  %v1054_v9 = vsel %vm927_vm2, %v5488_v2, 0.0  ;;  %v5529_v32 = vpop.permute.xlu0 %1628  ;;  %v48_v51 = vld [vmem:[#allocation5 + $0x30] sm:$0xff]  ;;  %v49_v4 = vld [vmem:[#allocation5 + $0x38] sm:$0xff] }
 0x34e   :  { %v5494_v5 = vpop.eup %4935 }
 0x34f   :  { %v1051_v8 = vsel %vm927_vm2, %v5494_v5, 0.0  ;;  %v5500_v11 = vpop.eup %4937 }
 0x350   :  { %1052 = vadd.xlane.f32.xlu0 %v1051_v8  ;;  %1055 = vadd.xlane.f32.xlu1 %v1054_v9  ;;  %v1048_v52 = vsel %vm927_vm2, %v5500_v11, 0.0 }
 0x352   :  { %v5502_v18 = vpop.eup %4939 }
 0x353   :  { %v1069_v12 = vsel %vm927_vm2, %v5502_v18, 0.0  ;;  %v5508_v13 = vpop.eup %4941 }
 0x354   :  { %1070 = vadd.xlane.f32.xlu0 %v1069_v12  ;;  %1049 = vadd.xlane.f32.xlu1 %v1048_v52  ;;  %v1066_v23 = vsel %vm927_vm2, %v5508_v13, 0.0 }
 0x356   :  { %v5510_v14 = vpop.eup %4943 }
 0x357   :  { %v1063_v22 = vsel %vm927_vm2, %v5510_v14, 0.0 }
 0x358   :  { %1064 = vadd.xlane.f32.xlu0 %v1063_v22  ;;  %1067 = vadd.xlane.f32.xlu1 %v1066_v23  ;;  %v5582_v22 = vld [vmem:[#allocation5 + $0x28] sm:$0xff] }
 0x36e   :  { %1626 = vrot.lane.b32.xlu0 %v5251_v21, %s5142_s27 }
 0x372   :  { %1887 = vrot.lane.b32.xlu0 %v48_v51, %s5142_s27 }
 0x373   :  { %v966_v25 = vpop.xlane.xlu1 %965 }
 0x374   :  { %v988_v26 = vsub.f32 %v5436_v16, %v966_v25 }
 0x376   :  { %v1016_v27 = vmul.f32 1.442695, %v988_v26 }
 0x377   :  { %v5531_v21 = vpop.permute.xlu1 %1715 }
 0x378   :  { %4945 = vpow2.f32 %v1016_v27 }
 0x37d   :  { %v1029_v7 = vpop.xlane.xlu0 %1028 }
 0x37e   :  { %4947 = vrcp.f32 %v1029_v7 }
 0x385   :  { %v5521_v3 = vpop.eup %4945 }
 0x386   :  { %v1060_v30 = vsel %vm927_vm2, %v5521_v3, 0.0 }
 0x387   :  { %1061 = vadd.xlane.f32.xlu1 %v1060_v30 }
 0x38b   :  { %v4948_v33 = vpop.eup %4947 }
 0x38c   :  { %v1089_v36 = vmul.f32 %v4948_v33, %v5440_v17 }
 0x398   :  { %1713 = vrot.lane.b32.xlu1 %v5249_v20, %s5142_s27 }
 0x39c   :  { %1889 = vrot.lane.b32.xlu1 %v49_v4, %s5142_s27 }
 0x3a0   :  { %1885 = vrot.lane.b32.xlu1 %v5582_v22, %s5142_s27 }
 0x3a8   :  { %v1026_v16 = vpop.xlane.xlu1 %1025 }
 0x3a9   :  { %4949 = vrcp.f32 %v1026_v16 }
 0x3b6   :  { %v4950_v10 = vpop.eup %4949 }
 0x3b7   :  { %v1088_v34 = vmul.f32 %v4950_v10, %v5447_v38 }
 0x3b9   :  { %4639 = vmatprep.mubr.msk.f32.mxu1 %vm927_vm2, %v1088_v34 }
 0x3ba   :  { %4640 = vmatmul.mubr.msk.f32.vlgmr.msra.gmra.mxu1 %vm927_vm2, %v1089_v36 }
 0x3bb   :  { %4643 = vmatpush3.msra.mxu1 %v5339_v43 }
 0x3bc   :  { %4644 = vmatprep.subr.mxu1 %v5426_v57 }
 0x3bd   :  { %4645 = vmatpush3.msra.mxu1 %v5426_v57 }
 0x3be   :  { %4656 = vmatprep.subr.mxu1 %v5420_v54 }
 0x3c0   :  { %v1035_v20 = vpop.xlane.xlu0 %1034 }
 0x3c1   :  { %4951 = vrcp.f32 %v1035_v20 }
 0x3c9   :  { %v1047_v37 = vpop.xlane.xlu0 %1046 }
 0x3cd   :  { %v1032_v15 = vpop.xlane.xlu1 %1031 }
 0x3ce   :  { %4953 = vrcp.f32 %v1032_v15  ;;  %v4952_v45 = vpop.eup %4951 }
 0x3cf   :  { %4955 = vrcp.f32 %v1047_v37  ;;  %v1091_v29 = vmul.f32 %v4952_v45, %v5456_v56 }
 0x3d1   :  { %v1041_v38 = vpop.xlane.xlu0 %1040  ;;  %v1044_v40 = vpop.xlane.xlu1 %1043 }
 0x3d2   :  { %4957 = vrcp.f32 %v1044_v40 }
 0x3d3   :  { %4959 = vrcp.f32 %v1041_v38 }
 0x3d5   :  { %v1059_v17 = vpop.xlane.xlu0 %1058  ;;  %v1038_v41 = vpop.xlane.xlu1 %1037 }
 0x3d6   :  { %4961 = vrcp.f32 %v1038_v41 }
 0x3d7   :  { %4963 = vrcp.f32 %v1059_v17 }
 0x3d9   :  { %v1056_v43 = vpop.xlane.xlu1 %1055  ;;  %v1053_v57 = vpop.xlane.xlu0 %1052 }
 0x3da   :  { %4965 = vrcp.f32 %v1056_v43 }
 0x3db   :  { %v4954_v28 = vpop.eup %4953  ;;  %4967 = vrcp.f32 %v1053_v57 }
 0x3dc   :  { %v1090_v48 = vmul.f32 %v4954_v28, %v5471_v39  ;;  %v4956_v53 = vpop.eup %4955 }
 0x3dd   :  { %v1050_v49 = vpop.xlane.xlu1 %1049  ;;  %v1095_v39 = vmul.f32 %v4956_v53, %v5465_v42  ;;  %v1071_v62 = vpop.xlane.xlu0 %1070 }
 0x3de   :  { %4646 = vmatprep.mubr.msk.f32.mxu1 %vm927_vm2, %v1090_v48  ;;  %4969 = vrcp.f32 %v1050_v49 }
 0x3df   :  { %4647 = vmatmul.mubr.msk.f32.vlgmr.msra.gmra.mxu1 %vm927_vm2, %v1091_v29  ;;  %v4958_v31 = vpop.eup %4957 }
 0x3e0   :  { %4657 = vmatpush3.msra.mxu1 %v5420_v54  ;;  %v1094_v59 = vmul.f32 %v4958_v31, %v5475_v61  ;;  %v4960_v56 = vpop.eup %4959 }
 0x3e1   :  { %4658 = vmatprep.subr.mxu1 %v5430_v58  ;;  %v1068_v35 = vpop.xlane.xlu1 %1067 }
 0x3e2   :  { %4659 = vmatpush3.msra.mxu1 %v5430_v58  ;;  %4971 = vrcp.f32 %v1068_v35  ;;  %4660 = vmatprep.mubr.msk.f32.mxu1 %vm927_vm2, %v1094_v59  ;;  %v1093_v58 = vmul.f32 %v4960_v56, %v5478_v63  ;;  %v1065_v63 = vpop.xlane.xlu0 %1064 }
 0x3e3   :  { %4670 = vmatprep.subr.mxu1 %v5424_v55  ;;  %v4962_v60 = vpop.eup %4961  ;;  %4661 = vmatmul.mubr.msk.f32.vlgmr.msra.gmra.mxu1 %vm927_vm2, %v1095_v39  ;;  %4973 = vrcp.f32 %v1071_v62 }
 0x3e4   :  { %4671 = vmatpush3.msra.mxu1 %v5424_v55  ;;  %v1092_v54 = vmul.f32 %v4962_v60, %v5484_v50  ;;  %v4964_v61 = vpop.eup %4963  ;;  %4975 = vrcp.f32 %v1065_v63 }
 0x3e5   :  { %4672 = vmatprep.subr.mxu1 %v5518_v24  ;;  %v1099_v46 = vmul.f32 %v4964_v61, %v5486_v1 }
 0x3e6   :  { %4673 = vmatpush3.msra.mxu1 %v5518_v24  ;;  %4653 = vmatprep.mubr.msk.f32.mxu0 %vm927_vm2, %v1092_v54  ;;  %v1627_v1 = vpop.permute.xlu0 %1626 }
 0x3e7   :  { %v4966_v42 = vpop.eup %4965  ;;  %4684 = vmatprep.subr.mxu1 %v5531_v21  ;;  %4654 = vmatmul.mubr.msk.f32.vlgmr.msra.gmra.mxu0 %vm927_vm2, %v1093_v58 }
 0x3e8   :  { %4664 = vmatpush3.msra.mxu0 %v5341_v44  ;;  %v1098_v55 = vmul.f32 %v4966_v42, %v5488_v2  ;;  %v4968_v0 = vpop.eup %4967 }
 0x3e9   :  { %4665 = vmatprep.subr.mxu0 %v5527_v6  ;;  %v1097_v19 = vmul.f32 %v4968_v0, %v5494_v5 }
 0x3ea   :  { %4666 = vmatpush3.msra.mxu0 %v5527_v6  ;;  %4674 = vmatprep.mubr.msk.f32.mxu1 %vm927_vm2, %v1098_v55  ;;  %v1888_v25 = vpop.permute.xlu0 %1887 }
 0x3eb   :  { %v4970_v47 = vpop.eup %4969  ;;  %4677 = vmatprep.subr.mxu0 %v5529_v32  ;;  %4675 = vmatmul.mubr.msk.f32.vlgmr.msra.gmra.mxu1 %vm927_vm2, %v1099_v46 }
 0x3ec   :  { %4685 = vmatpush3.msra.mxu1 %v5531_v21  ;;  %v1096_v44 = vmul.f32 %v4970_v47, %v5500_v11 }
 0x3ee   :  { %4667 = vmatprep.mubr.msk.f32.mxu0 %vm927_vm2, %v1096_v44 }
 0x3ef   :  { %v4972_v50 = vpop.eup %4971  ;;  %4668 = vmatmul.mubr.msk.f32.vlgmr.msra.gmra.mxu0 %vm927_vm2, %v1097_v19  ;;  %v4318_v19 = vld [vmem:[#allocation5 + $0xe0] ss:$0 sm:$0xff] }
 0x3f0   :  { %4678 = vmatpush3.msra.mxu0 %v5529_v32  ;;  %v1102_v2 = vmul.f32 %v4972_v50, %v5508_v13  ;;  %v4974_v8 = vpop.eup %4973 }
 0x3f1   :  { %4679 = vmatprep.subr.mxu0 %v1627_v1  ;;  %v1103_v11 = vmul.f32 %v4974_v8, %v5502_v18  ;;  %v4976_v12 = vpop.eup %4975  ;;  %v46_v18 = vld [vmem:[#allocation5 + $0x20] sm:$0xff]  ;;  %v5625_v8 = vld [vmem:[#allocation2] sm:$0xff] }
 0x3f2   :  { %4680 = vmatpush3.msra.mxu0 %v1627_v1  ;;  %4688 = vmatprep.mubr.msk.f32.mxu1 %vm927_vm2, %v1102_v2  ;;  %v1101_v23 = vmul.f32 %v4976_v12, %v5510_v14 }
 0x410   :  { %v1062_v5 = vpop.xlane.xlu1 %1061 }
 0x411   :  { %4977 = vrcp.f32 %v1062_v5 }
 0x414   :  { %v1714_v9 = vpop.permute.xlu1 %1713 }
 0x415   :  { %4686 = vmatprep.subr.mxu1 %v1714_v9 }
 0x416   :  { %4687 = vmatpush3.msra.mxu1 %v1714_v9 }
 0x417   :  { %4689 = vmatmul.mubr.msk.f32.vlgmr.msra.gmra.mxu1 %vm927_vm2, %v1103_v11  ;;  %4702 = vmatprep.subr.mxu1 %v49_v4 }
 0x418   :  { %4703 = vmatpush3.msra.mxu1 %v49_v4  ;;  %v1890_v24 = vpop.permute.xlu1 %1889 }
 0x419   :  { %4704 = vmatprep.subr.mxu1 %v48_v51  ;;  %4691 = vmatprep.subr.mxu0 %v1890_v24 }
 0x41a   :  { %4705 = vmatpush3.msra.mxu1 %v48_v51  ;;  %v5622_v51 = vld [vmem:[#allocation2 + $0x8] sm:$0xff] }
 0x41b   :  { %4706 = vmatprep.subr.mxu1 %v5582_v22 }
 0x41c   :  { %4707 = vmatpush3.msra.mxu1 %v5582_v22  ;;  %v1886_v14 = vpop.permute.xlu1 %1885 }
 0x41d   :  { %4708 = vmatprep.subr.mxu1 %v46_v18 }
 0x41e   :  { %v4978_v52 = vpop.eup %4977  ;;  %4709 = vmatpush3.msra.mxu1 %v46_v18 }
 0x41f   :  { %v1100_v13 = vmul.f32 %v4978_v52, %v5521_v3  ;;  %v5057_v52 = vld [vmem:[#allocation5 + $0x18] sm:$0xff] }
 0x421   :  { %4681 = vmatprep.mubr.msk.f32.mxu0 %vm927_vm2, %v1100_v13  ;;  %v5058_v13 = vld [vmem:[#allocation5 + $0x10] sm:$0xff] }
 0x422   :  { %4682 = vmatmul.mubr.msk.f32.vlgmr.msra.gmra.mxu0 %vm927_vm2, %v1101_v23  ;;  %v5059_v23 = vld [vmem:[#allocation5] sm:$0xff] }
 0x423   :  { %4692 = vmatpush3.msra.mxu0 %v1890_v24 }
 0x424   :  { %4693 = vmatprep.subr.mxu0 %v1888_v25 }
 0x425   :  { %4694 = vmatpush3.msra.mxu0 %v1888_v25 }
 0x426   :  { %4695 = vmatprep.subr.mxu0 %v1886_v14 }
 0x427   :  { %4696 = vmatpush3.msra.mxu0 %v1886_v14 }
 0x47a   :  { %v4641_v26 = vpop.f32.mrf.mxu1 }
 0x47c   :  { %v1182_v27 = vpop.f32.mrf.mxu1 }
 0x49f   :  { %v4648_v3 = vpop.f32.mrf.mxu1 }
 0x4a0   :  { %1804 = vrot.lane.b32.xlu0 %v4648_v3, %s5143_s28 }
 0x4a1   :  { %v1269_v30 = vpop.f32.mrf.mxu1 }
 0x4a3   :  { %v4662_v6 = vpop.f32.mrf.mxu1 }
 0x4a4   :  { %1802 = vrot.lane.b32.xlu0 %v1269_v30, %s5143_s28  ;;  %1820 = vrot.lane.b32.xlu1 %v4662_v6, %s5144_s29 }
 0x4a5   :  { %v1443_v32 = vpop.f32.mrf.mxu1 }
 0x4a7   :  { %v4655_v21 = vpop.f32.mrf.mxu0 }
 0x4a8   :  { %1818 = vrot.lane.b32.xlu1 %v1443_v32, %s5144_s29  ;;  %1812 = vrot.lane.b32.xlu0 %v4655_v21, %s5132_s13 }
 0x4a9   :  { %v1356_v7 = vpop.f32.mrf.mxu0 }
 0x4ab   :  { %v4676_v16 = vpop.f32.mrf.mxu1 }
 0x4ac   :  { %1810 = vrot.lane.b32.xlu1 %v1356_v7, %s5132_s13  ;;  %1836 = vrot.lane.b32.xlu0 %v4676_v16, %s5145_s30 }
 0x4ad   :  { %v1617_v33 = vpop.f32.mrf.mxu1 }
 0x4af   :  { %v4669_v10 = vpop.f32.mrf.mxu0 }
 0x4b0   :  { %1834 = vrot.lane.b32.xlu0 %v1617_v33, %s5145_s30  ;;  %1828 = vrot.lane.b32.xlu1 %v4669_v10, %s5146_s3  ;;  %v5060_v33 = vld [vmem:[#allocation5 + $0x8] sm:$0xff] }
 0x4b1   :  { %v1530_v34 = vpop.f32.mrf.mxu0 }
 0x4b4   :  { %1826 = vrot.lane.b32.xlu0 %v1530_v34, %s5146_s3 }
 0x4d7   :  { %v4690_v36 = vpop.f32.mrf.mxu1 }
 0x4d9   :  { %v1791_v20 = vpop.f32.mrf.mxu1 }
 0x4da   :  { %1850 = vrot.lane.b32.xlu1 %v1791_v20, %s5147_s4 }
 0x4e2   :  { %v4683_v37 = vpop.f32.mrf.mxu0 }
 0x4e3   :  { %1844 = vrot.lane.b32.xlu0 %v4683_v37, %s5148_s5 }
 0x4e4   :  { %v1704_v15 = vpop.f32.mrf.mxu0 }
 0x4e5   :  { %1842 = vrot.lane.b32.xlu1 %v1704_v15, %s5148_s5 }
 0x4e7   :  { %1883 = vrot.lane.b32.xlu0 %v46_v18, %s5142_s27 }
 0x4e9   :  { %1852 = vrot.lane.b32.xlu1 %v4690_v36, %s5147_s4 }
 0x512   :  { %v1805_v38 = vpop.permute.xlu0 %1804 }
 0x513   :  { %v1857_v31 = vsel %vm196_vm1, %v4641_v26, %v1805_v38 }
 0x516   :  { %v1803_v40 = vpop.permute.xlu0 %1802  ;;  %v1821_v17 = vpop.permute.xlu1 %1820 }
 0x517   :  { %v1856_v48 = vsel %vm196_vm1, %v1182_v27, %v1803_v40 }
 0x51a   :  { %v1813_v41 = vpop.permute.xlu0 %1812  ;;  %v1819_v43 = vpop.permute.xlu1 %1818 }
 0x51b   :  { %v1860_v35 = vsel %vm1858_vm3, %v1857_v31, %v1813_v41 }
 0x51c   :  { %v1863_v62 = vsel %vm1861_vm4, %v1860_v35, %v1821_v17 }
 0x51e   :  { %v1837_v45 = vpop.permute.xlu0 %1836  ;;  %v1811_v28 = vpop.permute.xlu1 %1810 }
 0x51f   :  { %v1859_v29 = vsel %vm1858_vm3, %v1856_v48, %v1811_v28 }
 0x520   :  { %v1862_v59 = vsel %vm1861_vm4, %v1859_v29, %v1819_v43 }
 0x522   :  { %v1835_v57 = vpop.permute.xlu0 %1834  ;;  %v1829_v49 = vpop.permute.xlu1 %1828 }
 0x523   :  { %v1865_v54 = vsel %vm927_vm2, %v1863_v62, %v1829_v49  ;;  %v4322_v49 = vld [vmem:[#allocation5 + $0xe2] ss:$0 sm:$0xff] }
 0x524   :  { %v1868_v0 = vsel %vm1866_vm5, %v1865_v54, %v1837_v45  ;;  %v4321_v45 = vld [vmem:[#allocation5 + $0xe1] ss:$0 sm:$0xff] }
 0x526   :  { %v1827_v53 = vpop.permute.xlu0 %1826 }
 0x527   :  { %v1864_v56 = vsel %vm927_vm2, %v1862_v59, %v1827_v53 }
 0x528   :  { %v1867_v58 = vsel %vm1866_vm5, %v1864_v56, %v1835_v57 }
 0x54c   :  { %v1851_v39 = vpop.permute.xlu1 %1850 }
 0x555   :  { %v1845_v60 = vpop.permute.xlu0 %1844 }
 0x556   :  { %v1871_v63 = vsel %vm1869_vm7, %v1868_v0, %v1845_v60 }
 0x557   :  { %v1843_v61 = vpop.permute.xlu1 %1842 }
 0x558   :  { %v1870_v42 = vsel %vm1869_vm7, %v1867_v58, %v1843_v61 }
 0x559   :  { %v1884_v55 = vpop.permute.xlu0 %1883  ;;  %v1873_v46 = vsel %vm1872_vm6, %v1870_v42, %v1851_v39 }
 0x55a   :  { %4697 = vmatprep.subr.mxu0 %v1884_v55  ;;  %4699 = vmatprep.mubr.msk.f32.mxu0 %vm80_vm0, %v1873_v46 }
 0x55b   :  { %4698 = vmatpush3.msra.mxu0 %v1884_v55  ;;  %v1853_v47 = vpop.permute.xlu1 %1852 }
 0x55c   :  { %v1874_v44 = vsel %vm1872_vm6, %v1871_v63, %v1853_v47 }
 0x55d   :  { %4700 = vmatmul.mubr.msk.f32.vlgmr.msra.gmra.mxu0 %vm80_vm0, %v1874_v44 }
 0x61d   :  { %v4701_v50 = vpop.f32.mrf.mxu0 }
 0x61e   :  { %v1973_v1 = vadd.f32 %v4701_v50, %v4318_v19 }
 0x61f   :  { %v1967_v2 = vpop.f32.mrf.mxu0 }
 0x620   :  { %v1977_v4 = vadd.f32 %v5622_v51, %v1973_v1  ;;  %v1968_v5 = vadd.f32 %v4318_v19, %v1967_v2 }
 0x622   :  { %v1976_v9 = vadd.f32 %v5625_v8, %v1968_v5  ;;  %v1981_v11 = vsel %vm80_vm0, %v1977_v4, 0.0 }
 0x623   :  { %1982 = vadd.xlane.f32.xlu1 %v1981_v11 }
 0x624   :  { %v1978_v12 = vsel %vm80_vm0, %v1976_v9, 0.0 }
 0x625   :  { %1979 = vadd.xlane.f32.xlu0 %v1978_v12 }
 0x634   :  { %2110 = vrot.lane.b32.xlu1 %v5057_v52, %s5149_s6 }
 0x638   :  { %2019 = vrot.lane.b32.xlu1 %v5622_v51, %s5141_s26 }
 0x63c   :  { %2108 = vrot.lane.b32.xlu1 %v5058_v13, %s5149_s6 }
 0x640   :  { %2104 = vrot.lane.b32.xlu1 %v5059_v23, %s5149_s6 }
 0x6ac   :  { %v1983_v18 = vpop.xlane.xlu1 %1982 }
 0x6ad   :  { %v1986_v24 = vmul.f32 0.03125, %v1983_v18 }
 0x6ae   :  { %v1980_v25 = vpop.xlane.xlu0 %1979 }
 0x6af   :  { %v1988_v14 = vsub.f32 %v1977_v4, %v1986_v24  ;;  %v1985_v26 = vmul.f32 0.03125, %v1980_v25 }
 0x6b0   :  { %v2111_v21 = vpop.permute.xlu1 %2110 }
 0x6b1   :  { %v1987_v27 = vsub.f32 %v1976_v9, %v1985_v26  ;;  %v1990_v3 = vmul.f32 %v1988_v14, %v1988_v14  ;;  %4713 = vmatprep.subr.mxu0 %v2111_v21 }
 0x6b2   :  { %4714 = vmatpush3.msra.mxu0 %v2111_v21 }
 0x6b3   :  { %v1994_v30 = vsel %vm80_vm0, %v1990_v3, 0.0  ;;  %v1989_v6 = vmul.f32 %v1987_v27, %v1987_v27 }
 0x6b4   :  { %1995 = vadd.xlane.f32.xlu0 %v1994_v30  ;;  %v5637_v7 = vpop.permute.xlu1 %2019 }
 0x6b5   :  { %v1991_v32 = vsel %vm80_vm0, %v1989_v6, 0.0 }
 0x6b8   :  { %1992 = vadd.xlane.f32.xlu0 %v1991_v32  ;;  %v2109_v16 = vpop.permute.xlu1 %2108 }
 0x6b9   :  { %4715 = vmatprep.subr.mxu0 %v2109_v16 }
 0x6ba   :  { %4716 = vmatpush3.msra.mxu0 %v2109_v16 }
 0x6bc   :  { %v2105_v17 = vpop.permute.xlu1 %2104 }
 0x6ce   :  { %2017 = vrot.lane.b32.xlu0 %v5625_v8, %s5141_s26 }
 0x6d2   :  { %2106 = vrot.lane.b32.xlu0 %v5060_v33, %s5149_s6 }
 0x73d   :  { %v1996_v10 = vpop.xlane.xlu0 %1995 }
 0x73e   :  { %v1998_v34 = vmul.f32 0.03125, %v1996_v10 }
 0x740   :  { %v2000_v36 = vadd.f32 1e-05, %v1998_v34 }
 0x741   :  { %v1993_v20 = vpop.xlane.xlu0 %1992 }
 0x742   :  { %4979 = vrsqrt.f32 %v2000_v36  ;;  %v1997_v37 = vmul.f32 0.03125, %v1993_v20 }
 0x744   :  { %v1999_v15 = vadd.f32 1e-05, %v1997_v37 }
 0x745   :  { %v5642_v38 = vpop.permute.xlu0 %2017 }
 0x746   :  { %4981 = vrsqrt.f32 %v1999_v15  ;;  %4710 = vmatprep.mubr.msk.f32.mxu1 %vm80_vm0, %v5642_v38 }
 0x747   :  { %4711 = vmatmul.mubr.msk.f32.vlgmr.msra.gmra.mxu1 %vm80_vm0, %v5637_v7 }
 0x749   :  { %v2107_v40 = vpop.permute.xlu0 %2106 }
 0x74a   :  { %4717 = vmatprep.subr.mxu0 %v2107_v40 }
 0x74b   :  { %4718 = vmatpush3.msra.mxu0 %v2107_v40 }
 0x74c   :  { %4719 = vmatprep.subr.mxu0 %v2105_v17 }
 0x74d   :  { %4720 = vmatpush3.msra.mxu0 %v2105_v17 }
 0x74f   :  { %v4980_v41 = vpop.eup %4979 }
 0x750   :  { %v2004_v43 = vmul.f32 %v4980_v41, %v1988_v14 }
 0x752   :  { %v2010_v48 = vmul.f32 %v4321_v45, %v2004_v43 }
 0x753   :  { %v4982_v28 = vpop.eup %4981 }
 0x754   :  { %v2003_v57 = vmul.f32 %v4982_v28, %v1987_v27  ;;  %v2016_v31 = vadd.f32 %v4322_v49, %v2010_v48 }
 0x756   :  { %v2009_v29 = vmul.f32 %v4321_v45, %v2003_v57 }
 0x758   :  { %v2015_v53 = vadd.f32 %v4322_v49, %v2009_v29 }
 0x75a   :  { %4721 = vmatprep.mubr.msk.f32.mxu0 %vm80_vm0, %v2015_v53 }
 0x75b   :  { %4722 = vmatmul.mubr.msk.f32.vlgmr.msra.gmra.mxu0 %vm80_vm0, %v2016_v31 }
 0x807   :  { %v4712_v35 = vpop.f32.mrf.mxu1 }
 0x808   :  { %2231 = vrot.lane.b32.xlu0 %v4712_v35, %s5135_s1  ;;  %4724 = vmatprep.subr.msk.mxu1 %vm196_vm1, %v4712_v35 }
 0x809   :  { %v2091_v59 = vpop.f32.mrf.mxu1  ;;  %4725 = vmatpush3.xpose.msk.msra.mxu1 %vm196_vm1, %v4712_v35 }
 0x80a   :  { %2229 = vrot.lane.b32.xlu1 %v2091_v59, %s5135_s1  ;;  %4726 = vmatprep.subr.msk.mxu1 %vm196_vm1, %v2091_v59 }
 0x80c   :  { %2235 = vrot.lane.b32.xlu0 %v4712_v35, %s5134_s0 }
 0x80d   :  { %4727 = vmatpush3.xpose.msk.msra.mxu1 %vm196_vm1, %v2091_v59 }
 0x80e   :  { %2237 = vrot.lane.b32.xlu1 %v2091_v59, %s5136_s21 }
 0x810   :  { %2239 = vrot.lane.b32.xlu0 %v4712_v35, %s5136_s21 }
 0x812   :  { %2243 = vrot.lane.b32.xlu1 %v4712_v35, %s5138_s23 }
 0x814   :  { %2233 = vrot.lane.b32.xlu0 %v2091_v59, %s5134_s0 }
 0x816   :  { %2245 = vrot.lane.b32.xlu1 %v2091_v59, %s5137_s22 }
 0x818   :  { %2247 = vrot.lane.b32.xlu0 %v4712_v35, %s5137_s22 }
 0x81a   :  { %2251 = vrot.lane.b32.xlu1 %v4712_v35, %s5140_s25 }
 0x81b   :  { %v4723_v39 = vpop.f32.mrf.mxu0 }
 0x81c   :  { %2241 = vrot.lane.b32.xlu0 %v2091_v59, %s5138_s23 }
 0x81d   :  { %v2188_v56 = vpop.f32.mrf.mxu0 }
 0x81e   :  { %2201 = vrot.lane.b32.xlu1 %v4723_v39, %s5135_s1  ;;  %4728 = vmatprep.mubr.msk.f32.mxu1 %vm196_vm1, %v2188_v56 }
 0x81f   :  { %4729 = vmatmul.mubr.msk.f32.vlgmr.msra.gmra.mxu1 %vm196_vm1, %v4723_v39 }
 0x820   :  { %2255 = vrot.lane.b32.xlu0 %v4712_v35, %s5139_s24 }
 0x822   :  { %2209 = vrot.lane.b32.xlu1 %v4723_v39, %s5136_s21 }
 0x824   :  { %2205 = vrot.lane.b32.xlu0 %v4723_v39, %s5134_s0 }
 0x826   :  { %2199 = vrot.lane.b32.xlu1 %v2188_v56, %s5135_s1 }
 0x828   :  { %2213 = vrot.lane.b32.xlu0 %v4723_v39, %s5138_s23 }
 0x82a   :  { %2217 = vrot.lane.b32.xlu1 %v4723_v39, %s5137_s22 }
 0x82c   :  { %2203 = vrot.lane.b32.xlu0 %v2188_v56, %s5134_s0 }
 0x82e   :  { %2207 = vrot.lane.b32.xlu1 %v2188_v56, %s5136_s21 }
 0x830   :  { %2249 = vrot.lane.b32.xlu0 %v2091_v59, %s5140_s25 }
 0x832   :  { %2253 = vrot.lane.b32.xlu1 %v2091_v59, %s5139_s24 }
 0x834   :  { %2211 = vrot.lane.b32.xlu0 %v2188_v56, %s5138_s23 }
 0x836   :  { %2215 = vrot.lane.b32.xlu1 %v2188_v56, %s5137_s22 }
 0x838   :  { %2219 = vrot.lane.b32.xlu0 %v2188_v56, %s5140_s25 }
 0x83a   :  { %2221 = vrot.lane.b32.xlu1 %v4723_v39, %s5140_s25 }
 0x83c   :  { %2223 = vrot.lane.b32.xlu0 %v2188_v56, %s5139_s24 }
 0x83e   :  { %2225 = vrot.lane.b32.xlu1 %v4723_v39, %s5139_s24 }
 0x840   :  { %2937 = vrot.lane.b32.xlu0 %v5625_v8, %s5150_s7 }
 0x842   :  { %2939 = vrot.lane.b32.xlu1 %v5622_v51, %s5150_s7 }
 0x844   :  { %3135 = vrot.lane.b32.xlu0 %v2091_v59, %s5141_s26 }
 0x846   :  { %3137 = vrot.lane.b32.xlu1 %v4712_v35, %s5141_s26 }
 0x87a   :  { %v2232_v60 = vpop.permute.xlu0 %2231 }
 0x87b   :  { %4731 = vmatprep.subr.msk.mxu0 %vm196_vm1, %v2232_v60  ;;  %3224 = vrot.lane.b32.xlu1 %v2232_v60, %s5141_s26 }
 0x87c   :  { %v2230_v62 = vpop.permute.xlu1 %2229  ;;  %4732 = vmatpush3.xpose.msk.msra.mxu0 %vm196_vm1, %v2232_v60 }
 0x87d   :  { %4733 = vmatprep.subr.msk.mxu0 %vm196_vm1, %v2230_v62 }
 0x87e   :  { %v2236_v54 = vpop.permute.xlu0 %2235 }
 0x87f   :  { %3222 = vrot.lane.b32.xlu1 %v2230_v62, %s5141_s26  ;;  %4738 = vmatprep.subr.msk.mxu1 %vm196_vm1, %v2236_v54 }
 0x880   :  { %3311 = vrot.lane.b32.xlu0 %v2236_v54, %s5141_s26  ;;  %v2238_v58 = vpop.permute.xlu1 %2237  ;;  %4734 = vmatpush3.xpose.msk.msra.mxu0 %vm196_vm1, %v2230_v62 }
 0x881   :  { %4739 = vmatpush3.xpose.msk.msra.mxu1 %vm196_vm1, %v2236_v54 }
 0x882   :  { %v2240_v61 = vpop.permute.xlu0 %2239 }
 0x883   :  { %4745 = vmatprep.subr.msk.mxu0 %vm196_vm1, %v2240_v61  ;;  %3398 = vrot.lane.b32.xlu1 %v2240_v61, %s5141_s26 }
 0x884   :  { %v2244_v42 = vpop.permute.xlu1 %2243 }
 0x886   :  { %v2234_v55 = vpop.permute.xlu0 %2233 }
 0x887   :  { %3396 = vrot.lane.b32.xlu1 %v2238_v58, %s5141_s26  ;;  %4740 = vmatprep.subr.msk.mxu1 %vm196_vm1, %v2234_v55 }
 0x888   :  { %3309 = vrot.lane.b32.xlu0 %v2234_v55, %s5141_s26  ;;  %v5702_v46 = vpop.permute.xlu1 %2245  ;;  %4741 = vmatpush3.xpose.msk.msra.mxu1 %vm196_vm1, %v2234_v55 }
 0x889   :  { %4752 = vmatprep.subr.msk.mxu1 %vm196_vm1, %v2244_v42 }
 0x88a   :  { %v2248_v0 = vpop.permute.xlu0 %2247 }
 0x88b   :  { %3572 = vrot.lane.b32.xlu1 %v2248_v0, %s5141_s26 }
 0x88c   :  { %3485 = vrot.lane.b32.xlu0 %v2244_v42, %s5141_s26  ;;  %v5708_v63 = vpop.permute.xlu1 %2251 }
 0x88e   :  { %v5710_v47 = vpop.permute.xlu0 %2241 }
 0x890   :  { %v2202_v44 = vpop.permute.xlu1 %2201 }
 0x892   :  { %v5712_v19 = vpop.permute.xlu0 %2255 }
 0x894   :  { %v2210_v50 = vpop.permute.xlu1 %2209 }
 0x896   :  { %v2206_v1 = vpop.permute.xlu0 %2205 }
 0x898   :  { %v2200_v2 = vpop.permute.xlu1 %2199 }
 0x899   :  { %4735 = vmatprep.mubr.msk.f32.mxu0 %vm196_vm1, %v2200_v2 }
 0x89a   :  { %4736 = vmatmul.mubr.msk.f32.vlgmr.msra.gmra.mxu0 %vm196_vm1, %v2202_v44  ;;  %v2214_v51 = vpop.permute.xlu0 %2213 }
 0x89b   :  { %4746 = vmatpush3.xpose.msk.msra.mxu0 %vm196_vm1, %v2240_v61 }
 0x89c   :  { %4747 = vmatprep.subr.msk.mxu0 %vm196_vm1, %v2238_v58  ;;  %v2218_v4 = vpop.permute.xlu1 %2217 }
 0x89e   :  { %v2204_v5 = vpop.permute.xlu0 %2203 }
 0x89f   :  { %4748 = vmatpush3.xpose.msk.msra.mxu0 %vm196_vm1, %v2238_v58  ;;  %4742 = vmatprep.mubr.msk.f32.mxu1 %vm196_vm1, %v2204_v5 }
 0x8a0   :  { %4759 = vmatprep.subr.msk.mxu0 %vm196_vm1, %v2248_v0  ;;  %v2208_v8 = vpop.permute.xlu1 %2207  ;;  %4743 = vmatmul.mubr.msk.f32.vlgmr.msra.gmra.mxu1 %vm196_vm1, %v2206_v1 }
 0x8a1   :  { %4753 = vmatpush3.xpose.msk.msra.mxu1 %vm196_vm1, %v2244_v42  ;;  %4749 = vmatprep.mubr.msk.f32.mxu0 %vm196_vm1, %v2208_v8 }
 0x8a2   :  { %4754 = vmatprep.subr.msk.mxu1 %vm196_vm1, %v5710_v47  ;;  %4750 = vmatmul.mubr.msk.f32.vlgmr.msra.gmra.mxu0 %vm196_vm1, %v2210_v50  ;;  %v5727_v9 = vpop.permute.xlu0 %2249 }
 0x8a3   :  { %4760 = vmatpush3.xpose.msk.msra.mxu0 %vm196_vm1, %v2248_v0 }
 0x8a4   :  { %4761 = vmatprep.subr.msk.mxu0 %vm196_vm1, %v5702_v46  ;;  %v5732_v11 = vpop.permute.xlu1 %2253 }
 0x8a5   :  { %4755 = vmatpush3.xpose.msk.msra.mxu1 %vm196_vm1, %v5710_v47 }
 0x8a6   :  { %4766 = vmatprep.subr.msk.mxu1 %vm196_vm1, %v5708_v63  ;;  %v2212_v12 = vpop.permute.xlu0 %2211 }
 0x8a7   :  { %4762 = vmatpush3.xpose.msk.msra.mxu0 %vm196_vm1, %v5702_v46  ;;  %4756 = vmatprep.mubr.msk.f32.mxu1 %vm196_vm1, %v2212_v12 }
 0x8a8   :  { %4773 = vmatprep.subr.msk.mxu0 %vm196_vm1, %v5712_v19  ;;  %v2216_v52 = vpop.permute.xlu1 %2215  ;;  %4757 = vmatmul.mubr.msk.f32.vlgmr.msra.gmra.mxu1 %vm196_vm1, %v2214_v51 }
 0x8a9   :  { %4767 = vmatpush3.xpose.msk.msra.mxu1 %vm196_vm1, %v5708_v63  ;;  %4763 = vmatprep.mubr.msk.f32.mxu0 %vm196_vm1, %v2216_v52 }
 0x8aa   :  { %4768 = vmatprep.subr.msk.mxu1 %vm196_vm1, %v5727_v9  ;;  %4764 = vmatmul.mubr.msk.f32.vlgmr.msra.gmra.mxu0 %vm196_vm1, %v2218_v4  ;;  %v2220_v13 = vpop.permute.xlu0 %2219 }
 0x8ab   :  { %4774 = vmatpush3.xpose.msk.msra.mxu0 %vm196_vm1, %v5712_v19  ;;  %4770 = vmatprep.mubr.msk.f32.mxu1 %vm196_vm1, %v2220_v13 }
 0x8ac   :  { %4775 = vmatprep.subr.msk.mxu0 %vm196_vm1, %v5732_v11  ;;  %v2222_v23 = vpop.permute.xlu1 %2221 }
 0x8ad   :  { %4769 = vmatpush3.xpose.msk.msra.mxu1 %vm196_vm1, %v5727_v9 }
 0x8ae   :  { %v2224_v18 = vpop.permute.xlu0 %2223 }
 0x8af   :  { %4776 = vmatpush3.xpose.msk.msra.mxu0 %vm196_vm1, %v5732_v11  ;;  %4777 = vmatprep.mubr.msk.f32.mxu0 %vm196_vm1, %v2224_v18 }
 0x8b0   :  { %4771 = vmatmul.mubr.msk.f32.vlgmr.msra.gmra.mxu1 %vm196_vm1, %v2222_v23  ;;  %v2226_v24 = vpop.permute.xlu1 %2225 }
 0x8b2   :  { %4778 = vmatmul.mubr.msk.f32.vlgmr.msra.gmra.mxu0 %vm196_vm1, %v2226_v24  ;;  %v5762_v25 = vpop.permute.xlu0 %2937 }
 0x8b4   :  { %v5764_v14 = vpop.permute.xlu1 %2939 }
 0x8b6   :  { %v3136_v27 = vpop.permute.xlu0 %3135 }
 0x8b8   :  { %v3138_v26 = vpop.permute.xlu1 %3137 }
 0x8b9   :  { %4780 = vmatprep.subr.mxu1 %v3138_v26 }
 0x8ba   :  { %4781 = vmatpush3.msra.mxu1 %v3138_v26 }
 0x8bb   :  { %4782 = vmatprep.subr.mxu1 %v3136_v27 }
 0x8bc   :  { %4783 = vmatpush3.msra.mxu1 %v3136_v27 }
 0x8df   :  { %v4730_v3 = vpop.f32.mrf.mxu1 }
 0x8e0   :  { %v2922_v30 = vmul.f32 0.5, %v4730_v3 }
 0x8e1   :  { %v2331_v6 = vpop.f32.mrf.mxu1 }
 0x8e2   :  { %v5767_v32 = vadd.f32 %v5764_v14, %v2922_v30  ;;  %v2921_v21 = vmul.f32 0.5, %v2331_v6 }
 0x8e4   :  { %v5770_v16 = vadd.f32 %v5762_v25, %v2921_v21  ;;  %v2962_v33 = vsel %vm927_vm2, %v5767_v32, -inf }
 0x8e5   :  { %2963 = vmax.xlane.f32.xlu1 %v2962_v33 }
 0x8e6   :  { %v2959_v10 = vsel %vm927_vm2, %v5770_v16, -inf }
 0x8e7   :  { %2960 = vmax.xlane.f32.xlu0 %v2959_v10 }
 0x8ed   :  { %v5776_v34 = vpop.permute.xlu1 %3224 }
 0x8ee   :  { %4787 = vmatprep.subr.mxu1 %v5776_v34 }
 0x8f2   :  { %v3312_v36 = vpop.permute.xlu0 %3311 }
 0x8f3   :  { %4794 = vmatprep.subr.mxu0 %v3312_v36 }
 0x8f4   :  { %4795 = vmatpush3.msra.mxu0 %v3312_v36 }
 0x8fa   :  { %v3310_v20 = vpop.permute.xlu0 %3309 }
 0x8fb   :  { %4796 = vmatprep.subr.mxu0 %v3310_v20 }
 0x8fc   :  { %4797 = vmatpush3.msra.mxu0 %v3310_v20 }
 0x8fe   :  { %v5779_v37 = vpop.permute.xlu0 %3485 }
 0x8ff   :  { %4808 = vmatprep.subr.mxu0 %v5779_v37 }
 0x95a   :  { %v4737_v15 = vpop.f32.mrf.mxu0 }
 0x95b   :  { %v2924_v40 = vmul.f32 0.5, %v4737_v15 }
 0x95c   :  { %v2414_v41 = vpop.f32.mrf.mxu0 }
 0x95d   :  { %v5783_v17 = vadd.f32 %v5764_v14, %v2924_v40  ;;  %v2923_v28 = vmul.f32 0.5, %v2414_v41 }
 0x95f   :  { %v2968_v43 = vsel %vm927_vm2, %v5783_v17, -inf  ;;  %v5791_v59 = vadd.f32 %v5762_v25, %v2923_v28 }
 0x960   :  { %v4744_v45 = vpop.f32.mrf.mxu1  ;;  %2969 = vmax.xlane.f32.xlu0 %v2968_v43  ;;  %v5847_v43 = vpop.permute.xlu1 %3222 }
 0x961   :  { %v2926_v57 = vmul.f32 0.5, %v4744_v45  ;;  %v2965_v55 = vsel %vm927_vm2, %v5791_v59, -inf }
 0x962   :  { %v2497_v48 = vpop.f32.mrf.mxu1  ;;  %v4751_v49 = vpop.f32.mrf.mxu0 }
 0x963   :  { %v5788_v29 = vadd.f32 %v5764_v14, %v2926_v57  ;;  %v2925_v53 = vmul.f32 0.5, %v2497_v48  ;;  %v2928_v31 = vmul.f32 0.5, %v4751_v49 }
 0x964   :  { %v2580_v35 = vpop.f32.mrf.mxu0  ;;  %v5851_v45 = vpop.permute.xlu1 %3398 }
 0x965   :  { %v5794_v39 = vadd.f32 %v5762_v25, %v2925_v53  ;;  %v2927_v56 = vmul.f32 0.5, %v2580_v35  ;;  %v2974_v60 = vsel %vm927_vm2, %v5788_v29, -inf  ;;  %v5804_v58 = vadd.f32 %v5764_v14, %v2928_v31 }
 0x966   :  { %2975 = vmax.xlane.f32.xlu0 %v2974_v60 }
 0x967   :  { %v5799_v62 = vadd.f32 %v5762_v25, %v2927_v56  ;;  %v2971_v54 = vsel %vm927_vm2, %v5794_v39, -inf  ;;  %v2980_v51 = vsel %vm927_vm2, %v5804_v58, -inf }
 0x968   :  { %v4758_v61 = vpop.f32.mrf.mxu1  ;;  %2972 = vmax.xlane.f32.xlu1 %v2971_v54  ;;  %v5853_v28 = vpop.permute.xlu1 %3396 }
 0x969   :  { %v2930_v42 = vmul.f32 0.5, %v4758_v61  ;;  %v2977_v1 = vsel %vm927_vm2, %v5799_v62, -inf }
 0x96a   :  { %v2663_v0 = vpop.f32.mrf.mxu1  ;;  %v4765_v44 = vpop.f32.mrf.mxu0  ;;  %2966 = vmax.xlane.f32.xlu0 %v2965_v55 }
 0x96b   :  { %v2929_v50 = vmul.f32 0.5, %v2663_v0  ;;  %v5813_v4 = vadd.f32 %v5764_v14, %v2930_v42  ;;  %v2932_v8 = vmul.f32 0.5, %v4765_v44 }
 0x96c   :  { %v2746_v2 = vpop.f32.mrf.mxu0  ;;  %2978 = vmax.xlane.f32.xlu1 %v2977_v1 }
 0x96d   :  { %v5816_v5 = vadd.f32 %v5762_v25, %v2929_v50  ;;  %v2931_v12 = vmul.f32 0.5, %v2746_v2  ;;  %v5824_v18 = vadd.f32 %v5764_v14, %v2932_v8  ;;  %v2986_v26 = vsel %vm927_vm2, %v5813_v4, -inf }
 0x96e   :  { %2981 = vmax.xlane.f32.xlu0 %v2980_v51 }
 0x96f   :  { %v5819_v52 = vadd.f32 %v5762_v25, %v2931_v12  ;;  %v2983_v13 = vsel %vm927_vm2, %v5816_v5, -inf  ;;  %v2992_v36 = vsel %vm927_vm2, %v5824_v18, -inf }
 0x970   :  { %v4772_v23 = vpop.f32.mrf.mxu1  ;;  %2984 = vmax.xlane.f32.xlu1 %v2983_v13 }
 0x971   :  { %v2934_v24 = vmul.f32 0.5, %v4772_v23  ;;  %v2989_v6 = vsel %vm927_vm2, %v5819_v52, -inf }
 0x972   :  { %v2829_v27 = vpop.f32.mrf.mxu1  ;;  %v4779_v3 = vpop.f32.mrf.mxu0  ;;  %2987 = vmax.xlane.f32.xlu0 %v2986_v26 }
 0x973   :  { %v2933_v30 = vmul.f32 0.5, %v2829_v27  ;;  %v5831_v21 = vadd.f32 %v5764_v14, %v2934_v24  ;;  %v2936_v10 = vmul.f32 0.5, %v4779_v3 }
 0x974   :  { %2990 = vmax.xlane.f32.xlu1 %v2989_v6  ;;  %v2912_v49 = vpop.f32.mrf.mxu0 }
 0x975   :  { %v5834_v33 = vadd.f32 %v5762_v25, %v2933_v30  ;;  %v5841_v15 = vadd.f32 %v5764_v14, %v2936_v10  ;;  %v2998_v40 = vsel %vm927_vm2, %v5831_v21, -inf  ;;  %v5857_v14 = vpop.permute.xlu1 %3572  ;;  %v2935_v31 = vmul.f32 0.5, %v2912_v49 }
 0x976   :  { %2993 = vmax.xlane.f32.xlu0 %v2992_v36 }
 0x977   :  { %v2995_v20 = vsel %vm927_vm2, %v5834_v33, -inf  ;;  %v3004_v41 = vsel %vm927_vm2, %v5841_v15, -inf }
 0x978   :  { %2996 = vmax.xlane.f32.xlu1 %v2995_v20 }
 0x979   :  { %v2964_v57 = vpop.xlane.xlu1 %2963 }
 0x97a   :  { %2999 = vmax.xlane.f32.xlu0 %v2998_v40  ;;  %v3008_v48 = vsub.f32 %v5767_v32, %v2964_v57 }
 0x97c   :  { %v3025_v53 = vmul.f32 1.442695, %v3008_v48 }
 0x97e   :  { %3005 = vmax.xlane.f32.xlu0 %v3004_v41  ;;  %4983 = vpow2.f32 %v3025_v53 }
 0x989   :  { %3570 = vrot.lane.b32.xlu1 %v5702_v46, %s5141_s26  ;;  %v5863_v46 = vadd.f32 %v5762_v25, %v2935_v31 }
 0x98b   :  { %v3001_v35 = vsel %vm927_vm2, %v5863_v46, -inf }
 0x994   :  { %3483 = vrot.lane.b32.xlu0 %v5710_v47, %s5141_s26  ;;  %v5867_v47 = vpop.eup %4983 }
 0x995   :  { %v3058_v56 = vsel %vm927_vm2, %v5867_v47, 0.0 }
 0x998   :  { %3659 = vrot.lane.b32.xlu0 %v5708_v63, %s5141_s26  ;;  %v2961_v63 = vpop.xlane.xlu0 %2960 }
 0x999   :  { %v3007_v32 = vsub.f32 %v5770_v16, %v2961_v63 }
 0x99b   :  { %v3023_v60 = vmul.f32 1.442695, %v3007_v32 }
 0x99d   :  { %4985 = vpow2.f32 %v3023_v60 }
 0x9aa   :  { %v5874_v25 = vpop.eup %4985 }
 0x9ab   :  { %v3055_v54 = vsel %vm927_vm2, %v5874_v25, 0.0 }
 0x9ad   :  { %3002 = vmax.xlane.f32.xlu1 %v3001_v35 }
 0x9b7   :  { %3059 = vadd.xlane.f32.xlu0 %v3058_v56 }
 0x9be   :  { %3746 = vrot.lane.b32.xlu1 %v5712_v19, %s5141_s26 }
 0x9e2   :  { %3056 = vadd.xlane.f32.xlu1 %v3055_v54 }
 0x9e9   :  { %v2970_v61 = vpop.xlane.xlu0 %2969 }
 0x9ea   :  { %v3010_v42 = vsub.f32 %v5783_v17, %v2970_v61 }
 0x9ec   :  { %v3029_v55 = vmul.f32 1.442695, %v3010_v42 }
 0x9ee   :  { %4987 = vpow2.f32 %v3029_v55 }
 0x9ef   :  { %v2976_v0 = vpop.xlane.xlu0 %2975 }
 0x9f0   :  { %v3012_v44 = vsub.f32 %v5788_v29, %v2976_v0 }
 0x9f1   :  { %v2973_v19 = vpop.xlane.xlu1 %2972 }
 0x9f2   :  { %v3033_v50 = vmul.f32 1.442695, %v3012_v44  ;;  %v3011_v16 = vsub.f32 %v5794_v39, %v2973_v19 }
 0x9f3   :  { %v2967_v1 = vpop.xlane.xlu0 %2966 }
 0x9f4   :  { %4989 = vpow2.f32 %v3033_v50  ;;  %v3009_v2 = vsub.f32 %v5791_v59, %v2967_v1  ;;  %v3031_v8 = vmul.f32 1.442695, %v3011_v16 }
 0x9f5   :  { %v2979_v51 = vpop.xlane.xlu1 %2978 }
 0x9f6   :  { %v3027_v12 = vmul.f32 1.442695, %v3009_v2  ;;  %v3013_v13 = vsub.f32 %v5799_v62, %v2979_v51 }
 0x9f7   :  { %v2982_v23 = vpop.xlane.xlu0 %2981 }
 0x9f8   :  { %4991 = vpow2.f32 %v3027_v12  ;;  %v3014_v17 = vsub.f32 %v5804_v58, %v2982_v23  ;;  %v3035_v29 = vmul.f32 1.442695, %v3013_v13 }
 0x9f9   :  { %v2985_v24 = vpop.xlane.xlu1 %2984  ;;  %4993 = vpow2.f32 %v3031_v8 }
 0x9fa   :  { %v3037_v26 = vmul.f32 1.442695, %v3014_v17  ;;  %v3015_v27 = vsub.f32 %v5816_v5, %v2985_v24  ;;  %v5061_v24 = vld [vmem:[#allocation5 + $0x30] sm:$0xff] }
 0x9fb   :  { %v5885_v39 = vpop.eup %4987  ;;  %v2988_v3 = vpop.xlane.xlu0 %2987 }
 0x9fc   :  { %4995 = vpow2.f32 %v3037_v26  ;;  %v3016_v59 = vsub.f32 %v5813_v4, %v2988_v3  ;;  %v3064_v30 = vsel %vm927_vm2, %v5885_v39, 0.0  ;;  %v3039_v62 = vmul.f32 1.442695, %v3015_v27 }
 0x9fd   :  { %v2991_v6 = vpop.xlane.xlu1 %2990  ;;  %3065 = vadd.xlane.f32.xlu0 %v3064_v30  ;;  %4997 = vpow2.f32 %v3035_v29  ;;  %v5062_v30 = vld [vmem:[#allocation5 + $0x38] sm:$0xff] }
 0x9fe   :  { %v3041_v58 = vmul.f32 1.442695, %v3016_v59  ;;  %v3017_v10 = vsub.f32 %v5819_v52, %v2991_v6 }
 0x9ff   :  { %v2994_v36 = vpop.xlane.xlu0 %2993 }
 0xa00   :  { %4999 = vpow2.f32 %v3041_v58  ;;  %v3018_v5 = vsub.f32 %v5824_v18, %v2994_v36  ;;  %v3043_v41 = vmul.f32 1.442695, %v3017_v10 }
 0xa01   :  { %v5892_v20 = vpop.eup %4989  ;;  %5001 = vpow2.f32 %v3039_v62  ;;  %v2997_v40 = vpop.xlane.xlu1 %2996 }
 0xa02   :  { %v3045_v4 = vmul.f32 1.442695, %v3018_v5  ;;  %v3019_v57 = vsub.f32 %v5834_v33, %v2997_v40  ;;  %v3070_v48 = vsel %vm927_vm2, %v5892_v20, 0.0 }
 0xa03   :  { %3071 = vadd.xlane.f32.xlu0 %v3070_v48  ;;  %v3000_v49 = vpop.xlane.xlu0 %2999 }
 0xa04   :  { %5003 = vpow2.f32 %v3045_v4  ;;  %v3020_v52 = vsub.f32 %v5831_v21, %v3000_v49  ;;  %v3047_v18 = vmul.f32 1.442695, %v3019_v57 }
 0xa05   :  { %v5898_v53 = vpop.eup %4991  ;;  %5005 = vpow2.f32 %v3043_v41  ;;  %v5945_v17 = vpop.permute.xlu1 %3570 }
 0xa06   :  { %v3049_v31 = vmul.f32 1.442695, %v3020_v52  ;;  %v3061_v35 = vsel %vm927_vm2, %v5898_v53, 0.0  ;;  %v5902_v56 = vpop.eup %4993 }
 0xa07   :  { %3062 = vadd.xlane.f32.xlu1 %v3061_v35  ;;  %v3006_v33 = vpop.xlane.xlu0 %3005  ;;  %v3067_v21 = vsel %vm927_vm2, %v5902_v56, 0.0 }
 0xa08   :  { %5007 = vpow2.f32 %v3049_v31  ;;  %v3022_v63 = vsub.f32 %v5841_v15, %v3006_v33 }
 0xa09   :  { %v5905_v32 = vpop.eup %4995  ;;  %5009 = vpow2.f32 %v3047_v18 }
 0xa0a   :  { %v3053_v60 = vmul.f32 1.442695, %v3022_v63  ;;  %v3076_v54 = vsel %vm927_vm2, %v5905_v32, 0.0  ;;  %v5911_v61 = vpop.eup %4997 }
 0xa0b   :  { %3068 = vadd.xlane.f32.xlu1 %v3067_v21  ;;  %3077 = vadd.xlane.f32.xlu0 %v3076_v54  ;;  %v3073_v15 = vsel %vm927_vm2, %v5911_v61, 0.0 }
 0xa0c   :  { %5011 = vpow2.f32 %v3053_v60 }
 0xa0d   :  { %v5913_v42 = vpop.eup %4999 }
 0xa0e   :  { %v5915_v55 = vpop.eup %5001  ;;  %v3082_v0 = vsel %vm927_vm2, %v5913_v42, 0.0 }
 0xa0f   :  { %3074 = vadd.xlane.f32.xlu1 %v3073_v15  ;;  %3083 = vadd.xlane.f32.xlu0 %v3082_v0  ;;  %v3079_v19 = vsel %vm927_vm2, %v5915_v55, 0.0 }
 0xa11   :  { %v5921_v44 = vpop.eup %5003 }
 0xa12   :  { %v3088_v50 = vsel %vm927_vm2, %v5921_v44, 0.0  ;;  %v5927_v16 = vpop.eup %5005 }
 0xa13   :  { %3080 = vadd.xlane.f32.xlu1 %v3079_v19  ;;  %3089 = vadd.xlane.f32.xlu0 %v3088_v50  ;;  %v3085_v2 = vsel %vm927_vm2, %v5927_v16, 0.0 }
 0xa15   :  { %v5929_v1 = vpop.eup %5007 }
 0xa16   :  { %v3094_v51 = vsel %vm927_vm2, %v5929_v1, 0.0  ;;  %v5935_v8 = vpop.eup %5009 }
 0xa17   :  { %3086 = vadd.xlane.f32.xlu1 %v3085_v2  ;;  %3095 = vadd.xlane.f32.xlu0 %v3094_v51  ;;  %v3091_v13 = vsel %vm927_vm2, %v5935_v8, 0.0 }
 0xa19   :  { %v5937_v12 = vpop.eup %5011 }
 0xa1a   :  { %v3100_v23 = vsel %vm927_vm2, %v5937_v12, 0.0 }
 0xa1b   :  { %3092 = vadd.xlane.f32.xlu1 %v3091_v13  ;;  %3101 = vadd.xlane.f32.xlu0 %v3100_v23 }
 0xa31   :  { %3657 = vrot.lane.b32.xlu0 %v5727_v9, %s5141_s26  ;;  %v5955_v9 = vpop.permute.xlu0 %3483 }
 0xa35   :  { %3909 = vrot.lane.b32.xlu0 %v5061_v24, %s5149_s6 }
 0xa36   :  { %v3003_v29 = vpop.xlane.xlu1 %3002 }
 0xa37   :  { %v3021_v26 = vsub.f32 %v5863_v46, %v3003_v29  ;;  %v5960_v46 = vpop.permute.xlu0 %3659 }
 0xa39   :  { %v3051_v27 = vmul.f32 1.442695, %v3021_v26 }
 0xa3a   :  { %v5962_v62 = vpop.permute.xlu1 %3746 }
 0xa3b   :  { %5013 = vpow2.f32 %v3051_v27 }
 0xa40   :  { %v3060_v6 = vpop.xlane.xlu0 %3059 }
 0xa41   :  { %5015 = vrcp.f32 %v3060_v6 }
 0xa48   :  { %v5949_v3 = vpop.eup %5013 }
 0xa49   :  { %v3097_v59 = vsel %vm927_vm2, %v5949_v3, 0.0 }
 0xa4a   :  { %3098 = vadd.xlane.f32.xlu1 %v3097_v59 }
 0xa4e   :  { %v5016_v10 = vpop.eup %5015 }
 0xa4f   :  { %v3120_v5 = vmul.f32 %v5016_v10, %v5867_v47 }
 0xa5b   :  { %3744 = vrot.lane.b32.xlu1 %v5732_v11, %s5141_s26 }
 0xa5f   :  { %3911 = vrot.lane.b32.xlu1 %v5062_v30, %s5149_s6 }
 0xa63   :  { %3907 = vrot.lane.b32.xlu1 %v5582_v22, %s5149_s6 }
 0xa6b   :  { %v3057_v58 = vpop.xlane.xlu1 %3056 }
 0xa6c   :  { %5017 = vrcp.f32 %v3057_v58 }
 0xa79   :  { %v5018_v36 = vpop.eup %5017 }
 0xa7a   :  { %v3119_v11 = vmul.f32 %v5018_v36, %v5874_v25 }
 0xa7c   :  { %4784 = vmatprep.mubr.msk.f32.mxu1 %vm927_vm2, %v3119_v11 }
 0xa7d   :  { %4785 = vmatmul.mubr.msk.f32.vlgmr.msra.gmra.mxu1 %vm927_vm2, %v3120_v5  ;;  %v5063_v5 = vld [vmem:[#allocation5 + $0x20] sm:$0xff] }
 0xa7e   :  { %4788 = vmatpush3.msra.mxu1 %v5776_v34 }
 0xa7f   :  { %4789 = vmatprep.subr.mxu1 %v5847_v43 }
 0xa80   :  { %4790 = vmatpush3.msra.mxu1 %v5847_v43 }
 0xa81   :  { %4801 = vmatprep.subr.mxu1 %v5851_v45 }
 0xa86   :  { %v3066_v22 = vpop.xlane.xlu0 %3065 }
 0xa87   :  { %5019 = vrcp.f32 %v3066_v22 }
 0xa8c   :  { %v3072_v40 = vpop.xlane.xlu0 %3071 }
 0xa90   :  { %v3063_v41 = vpop.xlane.xlu1 %3062 }
 0xa91   :  { %5021 = vrcp.f32 %v3063_v41 }
 0xa92   :  { %5023 = vrcp.f32 %v3072_v40 }
 0xa94   :  { %v3069_v25 = vpop.xlane.xlu1 %3068  ;;  %v3078_v47 = vpop.xlane.xlu0 %3077 }
 0xa95   :  { %5025 = vrcp.f32 %v3069_v25  ;;  %v5020_v49 = vpop.eup %5019 }
 0xa96   :  { %5027 = vrcp.f32 %v3078_v47  ;;  %v3122_v31 = vmul.f32 %v5020_v49, %v5885_v39 }
 0xa98   :  { %v3075_v4 = vpop.xlane.xlu1 %3074  ;;  %v3084_v57 = vpop.xlane.xlu0 %3083 }
 0xa99   :  { %5029 = vrcp.f32 %v3075_v4 }
 0xa9a   :  { %5031 = vrcp.f32 %v3084_v57 }
 0xa9c   :  { %v3081_v34 = vpop.xlane.xlu1 %3080  ;;  %v3090_v48 = vpop.xlane.xlu0 %3089 }
 0xa9d   :  { %5033 = vrcp.f32 %v3081_v34 }
 0xa9e   :  { %v5022_v43 = vpop.eup %5021  ;;  %5035 = vrcp.f32 %v3090_v48 }
 0xa9f   :  { %v3121_v52 = vmul.f32 %v5022_v43, %v5898_v53  ;;  %v5024_v35 = vpop.eup %5023 }
 0xaa0   :  { %v3087_v18 = vpop.xlane.xlu1 %3086  ;;  %v3096_v33 = vpop.xlane.xlu0 %3095  ;;  %v3124_v21 = vmul.f32 %v5024_v35, %v5892_v20 }
 0xaa1   :  { %5037 = vrcp.f32 %v3087_v18  ;;  %4791 = vmatprep.mubr.msk.f32.mxu1 %vm927_vm2, %v3121_v52 }
 0xaa2   :  { %v5026_v63 = vpop.eup %5025  ;;  %4792 = vmatmul.mubr.msk.f32.vlgmr.msra.gmra.mxu1 %vm927_vm2, %v3122_v31  ;;  %5039 = vrcp.f32 %v3096_v33 }
 0xaa3   :  { %4802 = vmatpush3.msra.mxu1 %v5851_v45  ;;  %v3123_v60 = vmul.f32 %v5026_v63, %v5902_v56  ;;  %v5028_v54 = vpop.eup %5027 }
 0xaa4   :  { %4803 = vmatprep.subr.mxu1 %v5853_v28  ;;  %v3093_v53 = vpop.xlane.xlu1 %3092  ;;  %v3126_v56 = vmul.f32 %v5028_v54, %v5905_v32  ;;  %v3102_v15 = vpop.xlane.xlu0 %3101 }
 0xaa5   :  { %5041 = vrcp.f32 %v3093_v53  ;;  %4804 = vmatpush3.msra.mxu1 %v5853_v28  ;;  %4798 = vmatprep.mubr.msk.f32.mxu0 %vm927_vm2, %v3123_v60 }
 0xaa6   :  { %v5030_v39 = vpop.eup %5029  ;;  %4815 = vmatprep.subr.mxu1 %v5857_v14  ;;  %4799 = vmatmul.mubr.msk.f32.vlgmr.msra.gmra.mxu0 %vm927_vm2, %v3124_v21  ;;  %5043 = vrcp.f32 %v3102_v15 }
 0xaa7   :  { %4809 = vmatpush3.msra.mxu0 %v5779_v37  ;;  %v3125_v45 = vmul.f32 %v5030_v39, %v5911_v61  ;;  %v5032_v20 = vpop.eup %5031 }
 0xaa8   :  { %4810 = vmatprep.subr.mxu0 %v5955_v9  ;;  %v3128_v61 = vmul.f32 %v5032_v20, %v5913_v42  ;;  %v3658_v19 = vpop.permute.xlu0 %3657 }
 0xaa9   :  { %4811 = vmatpush3.msra.mxu0 %v5955_v9  ;;  %4805 = vmatprep.mubr.msk.f32.mxu1 %vm927_vm2, %v3125_v45 }
 0xaaa   :  { %v5034_v28 = vpop.eup %5033  ;;  %4822 = vmatprep.subr.mxu0 %v5960_v46  ;;  %4806 = vmatmul.mubr.msk.f32.vlgmr.msra.gmra.mxu1 %vm927_vm2, %v3126_v56 }
 0xaab   :  { %4816 = vmatpush3.msra.mxu1 %v5857_v14  ;;  %v3127_v37 = vmul.f32 %v5034_v28, %v5915_v55  ;;  %v5036_v32 = vpop.eup %5035 }
 0xaac   :  { %4817 = vmatprep.subr.mxu1 %v5945_v17  ;;  %v3130_v55 = vmul.f32 %v5036_v32, %v5921_v44 }
 0xaad   :  { %4818 = vmatpush3.msra.mxu1 %v5945_v17  ;;  %4812 = vmatprep.mubr.msk.f32.mxu0 %vm927_vm2, %v3127_v37 }
 0xaae   :  { %v5038_v0 = vpop.eup %5037  ;;  %4829 = vmatprep.subr.mxu1 %v5962_v62  ;;  %4813 = vmatmul.mubr.msk.f32.vlgmr.msra.gmra.mxu0 %vm927_vm2, %v3128_v61 }
 0xaaf   :  { %4823 = vmatpush3.msra.mxu0 %v5960_v46  ;;  %v3129_v14 = vmul.f32 %v5038_v0, %v5927_v16  ;;  %v5040_v50 = vpop.eup %5039 }
 0xab0   :  { %4824 = vmatprep.subr.mxu0 %v3658_v19  ;;  %v3132_v51 = vmul.f32 %v5040_v50, %v5929_v1 }
 0xab1   :  { %4825 = vmatpush3.msra.mxu0 %v3658_v19  ;;  %4819 = vmatprep.mubr.msk.f32.mxu1 %vm927_vm2, %v3129_v14  ;;  %v4375_v19 = vld [vmem:[#allocation5 + $0xe3] ss:$0 sm:$0xff] }
 0xab2   :  { %v5042_v42 = vpop.eup %5041  ;;  %4820 = vmatmul.mubr.msk.f32.vlgmr.msra.gmra.mxu1 %vm927_vm2, %v3130_v55 }
 0xab3   :  { %4830 = vmatpush3.msra.mxu1 %v5962_v62  ;;  %v3131_v2 = vmul.f32 %v5042_v42, %v5935_v8  ;;  %v5044_v13 = vpop.eup %5043  ;;  %v3910_v8 = vpop.permute.xlu0 %3909 }
 0xab4   :  { %v3134_v24 = vmul.f32 %v5044_v13, %v5937_v12 }
 0xab5   :  { %4826 = vmatprep.mubr.msk.f32.mxu0 %vm927_vm2, %v3131_v2 }
 0xab6   :  { %4827 = vmatmul.mubr.msk.f32.vlgmr.msra.gmra.mxu0 %vm927_vm2, %v3132_v51 }
 0xad3   :  { %v3099_v16 = vpop.xlane.xlu1 %3098 }
 0xad4   :  { %5045 = vrcp.f32 %v3099_v16 }
 0xad7   :  { %v3745_v44 = vpop.permute.xlu1 %3744 }
 0xad8   :  { %4831 = vmatprep.subr.mxu1 %v3745_v44 }
 0xad9   :  { %4832 = vmatpush3.msra.mxu1 %v3745_v44 }
 0xadb   :  { %v3912_v1 = vpop.permute.xlu1 %3911 }
 0xadc   :  { %4836 = vmatprep.subr.mxu0 %v3912_v1 }
 0xadd   :  { %4837 = vmatpush3.msra.mxu0 %v3912_v1 }
 0xade   :  { %4838 = vmatprep.subr.mxu0 %v3910_v8 }
 0xadf   :  { %4839 = vmatpush3.msra.mxu0 %v3910_v8  ;;  %v3908_v29 = vpop.permute.xlu1 %3907 }
 0xae0   :  { %4840 = vmatprep.subr.mxu0 %v3908_v29 }
 0xae1   :  { %v5046_v23 = vpop.eup %5045  ;;  %4841 = vmatpush3.msra.mxu0 %v3908_v29 }
 0xae2   :  { %v3133_v17 = vmul.f32 %v5046_v23, %v5949_v3 }
 0xae4   :  { %4833 = vmatprep.mubr.msk.f32.mxu1 %vm927_vm2, %v3133_v17 }
 0xae5   :  { %4834 = vmatmul.mubr.msk.f32.vlgmr.msra.gmra.mxu1 %vm927_vm2, %v3134_v24 }
 0xb3d   :  { %v4786_v26 = vpop.f32.mrf.mxu1 }
 0xb3f   :  { %v3213_v27 = vpop.f32.mrf.mxu1 }
 0xb62   :  { %v4793_v59 = vpop.f32.mrf.mxu1 }
 0xb63   :  { %3835 = vrot.lane.b32.xlu0 %v4793_v59, %s5143_s28  ;;  %v52_v59 = vld [vmem:[#allocation5 + $0x50] sm:$0xff] }
 0xb64   :  { %v3300_v9 = vpop.f32.mrf.mxu1 }
 0xb66   :  { %v4800_v3 = vpop.f32.mrf.mxu0 }
 0xb67   :  { %3843 = vrot.lane.b32.xlu0 %v4800_v3, %s5132_s13  ;;  %v51_v3 = vld [vmem:[#allocation5 + $0x48] sm:$0xff] }
 0xb68   :  { %v3387_v12 = vpop.f32.mrf.mxu0 }
 0xb69   :  { %3841 = vrot.lane.b32.xlu1 %v3387_v12, %s5132_s13  ;;  %v50_v12 = vld [vmem:[#allocation5 + $0x40] sm:$0xff] }
 0xb6a   :  { %v4807_v30 = vpop.f32.mrf.mxu1 }
 0xb6b   :  { %3833 = vrot.lane.b32.xlu0 %v3300_v9, %s5143_s28  ;;  %v69_v9 = vld [vmem:[#allocation5 + $0xd8] sm:$0xff] }
 0xb6c   :  { %v3474_v6 = vpop.f32.mrf.mxu1 }
 0xb6d   :  { %3851 = vrot.lane.b32.xlu1 %v4807_v30, %s5144_s29  ;;  %v68_v30 = vld [vmem:[#allocation5 + $0xd0] sm:$0xff] }
 0xb6e   :  { %v4814_v46 = vpop.f32.mrf.mxu0 }
 0xb70   :  { %v3561_v62 = vpop.f32.mrf.mxu0 }
 0xb71   :  { %3859 = vrot.lane.b32.xlu1 %v4814_v46, %s5146_s3  ;;  %3857 = vrot.lane.b32.xlu0 %v3561_v62, %s5146_s3  ;;  %v67_v46 = vld [vmem:[#allocation5 + $0xc8] sm:$0xff]  ;;  %v66_v62 = vld [vmem:[#allocation5 + $0xc0] sm:$0xff] }
 0xb72   :  { %v4821_v58 = vpop.f32.mrf.mxu1 }
 0xb74   :  { %v3648_v11 = vpop.f32.mrf.mxu1 }
 0xb75   :  { %3849 = vrot.lane.b32.xlu1 %v3474_v6, %s5144_s29  ;;  %3867 = vrot.lane.b32.xlu0 %v4821_v58, %s5145_s30  ;;  %v65_v6 = vld [vmem:[#allocation5 + $0xb8] sm:$0xff]  ;;  %v64_v58 = vld [vmem:[#allocation5 + $0xb0] sm:$0xff] }
 0xb76   :  { %v4828_v10 = vpop.f32.mrf.mxu0 }
 0xb78   :  { %v3735_v36 = vpop.f32.mrf.mxu0 }
 0xb79   :  { %3875 = vrot.lane.b32.xlu0 %v4828_v10, %s5148_s5  ;;  %3873 = vrot.lane.b32.xlu1 %v3735_v36, %s5148_s5  ;;  %v63_v10 = vld [vmem:[#allocation5 + $0xa8] sm:$0xff]  ;;  %v62_v36 = vld [vmem:[#allocation5 + $0xa0] sm:$0xff] }
 0xb7d   :  { %3865 = vrot.lane.b32.xlu0 %v3648_v11, %s5145_s30  ;;  %v61_v11 = vld [vmem:[#allocation5 + $0x98] sm:$0xff] }
 0xb81   :  { %3905 = vrot.lane.b32.xlu0 %v5063_v5, %s5149_s6  ;;  %v60_v5 = vld [vmem:[#allocation5 + $0x90] sm:$0xff] }
 0xba5   :  { %v4835_v22 = vpop.f32.mrf.mxu1 }
 0xba7   :  { %v3822_v40 = vpop.f32.mrf.mxu1 }
 0xba8   :  { %3881 = vrot.lane.b32.xlu1 %v3822_v40, %s5147_s4  ;;  %v58_v40 = vld [vmem:[#allocation5 + $0x80] sm:$0xff] }
 0xbac   :  { %3883 = vrot.lane.b32.xlu1 %v4835_v22, %s5147_s4  ;;  %v59_v22 = vld [vmem:[#allocation5 + $0x88] sm:$0xff] }
 0xbd5   :  { %v3836_v41 = vpop.permute.xlu0 %3835 }
 0xbd6   :  { %v3888_v54 = vsel %vm196_vm1, %v4786_v26, %v3836_v41 }
 0xbd9   :  { %v3844_v25 = vpop.permute.xlu0 %3843 }
 0xbda   :  { %v3890_v39 = vsel %vm1858_vm3, %v3888_v54, %v3844_v25  ;;  %v55_v54 = vld [vmem:[#allocation5 + $0x68] sm:$0xff] }
 0xbdb   :  { %v3842_v43 = vpop.permute.xlu1 %3841 }
 0xbdd   :  { %v3834_v47 = vpop.permute.xlu0 %3833 }
 0xbde   :  { %v3887_v31 = vsel %vm196_vm1, %v3213_v27, %v3834_v47  ;;  %v53_v27 = vld [vmem:[#allocation5 + $0x58] sm:$0xff] }
 0xbdf   :  { %v3852_v52 = vpop.permute.xlu1 %3851  ;;  %v3889_v33 = vsel %vm1858_vm3, %v3887_v31, %v3842_v43  ;;  %4847 = vmatprep.subr.mxu1 %v53_v27 }
 0xbe0   :  { %v3892_v20 = vsel %vm1861_vm4, %v3890_v39, %v3852_v52  ;;  %4848 = vmatpush3.msra.mxu1 %v53_v27  ;;  %v4379_v52 = vld [vmem:[#allocation5 + $0xe5] ss:$0 sm:$0xff] }
 0xbe1   :  { %4849 = vmatprep.subr.mxu1 %v52_v59  ;;  %v54_v39 = vld [vmem:[#allocation5 + $0x60] sm:$0xff] }
 0xbe2   :  { %4850 = vmatpush3.msra.mxu1 %v52_v59 }
 0xbe3   :  { %v3858_v4 = vpop.permute.xlu0 %3857  ;;  %v3860_v18 = vpop.permute.xlu1 %3859  ;;  %4851 = vmatprep.subr.mxu1 %v51_v3 }
 0xbe4   :  { %v3894_v28 = vsel %vm927_vm2, %v3892_v20, %v3860_v18  ;;  %4852 = vmatpush3.msra.mxu1 %v51_v3 }
 0xbe5   :  { %4853 = vmatprep.subr.mxu1 %v50_v12 }
 0xbe6   :  { %4854 = vmatpush3.msra.mxu1 %v50_v12 }
 0xbe7   :  { %v3868_v57 = vpop.permute.xlu0 %3867  ;;  %v3850_v35 = vpop.permute.xlu1 %3849 }
 0xbe8   :  { %v3891_v63 = vsel %vm1861_vm4, %v3889_v33, %v3850_v35  ;;  %v3896_v37 = vsel %vm1866_vm5, %v3894_v28, %v3868_v57 }
 0xbe9   :  { %v3893_v53 = vsel %vm927_vm2, %v3891_v63, %v3858_v4 }
 0xbeb   :  { %v3876_v34 = vpop.permute.xlu0 %3875  ;;  %v3874_v60 = vpop.permute.xlu1 %3873 }
 0xbec   :  { %v3898_v61 = vsel %vm1869_vm7, %v3896_v37, %v3876_v34 }
 0xbef   :  { %v3866_v48 = vpop.permute.xlu0 %3865 }
 0xbf0   :  { %v3895_v21 = vsel %vm1866_vm5, %v3893_v53, %v3866_v48  ;;  %v57_v53 = vld [vmem:[#allocation5 + $0x78] sm:$0xff] }
 0xbf1   :  { %v3897_v56 = vsel %vm1869_vm7, %v3895_v21, %v3874_v60  ;;  %v56_v21 = vld [vmem:[#allocation5 + $0x70] sm:$0xff] }
 0xbf3   :  { %v3906_v49 = vpop.permute.xlu0 %3905 }
 0xbf4   :  { %4842 = vmatprep.subr.mxu0 %v3906_v49 }
 0xbf5   :  { %4843 = vmatpush3.msra.mxu0 %v3906_v49  ;;  %v4378_v49 = vld [vmem:[#allocation5 + $0xe4] ss:$0 sm:$0xff] }
 0xbf6   :  { %4858 = vmatprep.subr.mxu0 %v69_v9 }
 0xc1a   :  { %v3882_v45 = vpop.permute.xlu1 %3881 }
 0xc1b   :  { %v3899_v15 = vsel %vm1872_vm6, %v3897_v56, %v3882_v45  ;;  %v4380_v45 = vld [vmem:[#allocation5 + $0xe6] ss:$0 sm:$0xff] }
 0xc1c   :  { %4844 = vmatprep.mubr.msk.f32.mxu0 %vm80_vm0, %v3899_v15 }
 0xc1e   :  { %v3884_v32 = vpop.permute.xlu1 %3883 }
 0xc1f   :  { %v3900_v0 = vsel %vm1872_vm6, %v3898_v61, %v3884_v32  ;;  %v4383_v32 = vld [vmem:[#allocation5 + $0xe7] ss:$0 sm:$0xff] }
 0xc20   :  { %4845 = vmatmul.mubr.msk.f32.vlgmr.msra.gmra.mxu0 %vm80_vm0, %v3900_v0 }
 0xc21   :  { %4859 = vmatpush3.msra.mxu0 %v69_v9 }
 0xc22   :  { %4860 = vmatprep.subr.mxu0 %v68_v30 }
 0xc23   :  { %4861 = vmatpush3.msra.mxu0 %v68_v30  ;;  %v4384_v30 = vld [vmem:[#allocation5 + $0xe8] ss:$0 sm:$0xff] }
 0xc24   :  { %4862 = vmatprep.subr.mxu0 %v67_v46 }
 0xc25   :  { %4863 = vmatpush3.msra.mxu0 %v67_v46 }
 0xc26   :  { %4864 = vmatprep.subr.mxu0 %v66_v62 }
 0xc27   :  { %4865 = vmatpush3.msra.mxu0 %v66_v62 }
 0xc28   :  { %4866 = vmatprep.subr.mxu0 %v65_v6 }
 0xc29   :  { %4867 = vmatpush3.msra.mxu0 %v65_v6  ;;  %v4385_v6 = vld [vmem:[#allocation5 + $0xe9] ss:$0 sm:$0xff] }
 0xc2a   :  { %4868 = vmatprep.subr.mxu0 %v64_v58 }
 0xc2b   :  { %4869 = vmatpush3.msra.mxu0 %v64_v58 }
 0xc2c   :  { %4870 = vmatprep.subr.mxu0 %v63_v10 }
 0xc2d   :  { %4871 = vmatpush3.msra.mxu0 %v63_v10 }
 0xc2e   :  { %4872 = vmatprep.subr.mxu0 %v62_v36 }
 0xc2f   :  { %4873 = vmatpush3.msra.mxu0 %v62_v36 }
 0xc30   :  { %4874 = vmatprep.subr.mxu0 %v61_v11 }
 0xc31   :  { %4875 = vmatpush3.msra.mxu0 %v61_v11 }
 0xc32   :  { %4876 = vmatprep.subr.mxu0 %v60_v5 }
 0xc33   :  { %4877 = vmatpush3.msra.mxu0 %v60_v5 }
 0xc34   :  { %4878 = vmatprep.subr.mxu0 %v59_v22 }
 0xc35   :  { %4879 = vmatpush3.msra.mxu0 %v59_v22 }
 0xc36   :  { %4880 = vmatprep.subr.mxu0 %v58_v40 }
 0xc37   :  { %4881 = vmatpush3.msra.mxu0 %v58_v40 }
 0xc38   :  { %4882 = vmatprep.subr.mxu0 %v57_v53 }
 0xc39   :  { %4883 = vmatpush3.msra.mxu0 %v57_v53 }
 0xc3a   :  { %4884 = vmatprep.subr.mxu0 %v56_v21 }
 0xc3b   :  { %4885 = vmatpush3.msra.mxu0 %v56_v21 }
 0xc3c   :  { %4886 = vmatprep.subr.mxu0 %v55_v54 }
 0xc3d   :  { %4887 = vmatpush3.msra.mxu0 %v55_v54 }
 0xc3e   :  { %4888 = vmatprep.subr.mxu0 %v54_v39 }
 0xc3f   :  { %4889 = vmatpush3.msra.mxu0 %v54_v39 }
 0xce0   :  { %v4846_v14 = vpop.f32.mrf.mxu0 }
 0xce1   :  { %v3995_v55 = vadd.f32 %v4846_v14, %v4375_v19 }
 0xce2   :  { %v3989_v50 = vpop.f32.mrf.mxu0 }
 0xce3   :  { %v4001_v42 = vadd.f32 %v3995_v55, %v5637_v7  ;;  %v3990_v2 = vadd.f32 %v4375_v19, %v3989_v50 }
 0xce5   :  { %v4000_v51 = vadd.f32 %v3990_v2, %v5642_v38  ;;  %v4005_v16 = vsel %vm80_vm0, %v4001_v42, 0.0 }
 0xce6   :  { %4006 = vadd.xlane.f32.xlu1 %v4005_v16 }
 0xce7   :  { %v4002_v44 = vsel %vm80_vm0, %v4000_v51, 0.0 }
 0xce8   :  { %4003 = vadd.xlane.f32.xlu0 %v4002_v44 }
 0xd6f   :  { %v4007_v13 = vpop.xlane.xlu1 %4006 }
 0xd70   :  { %v4009_v23 = vmul.f32 0.03125, %v4007_v13 }
 0xd71   :  { %v4004_v17 = vpop.xlane.xlu0 %4003 }
 0xd72   :  { %v4008_v24 = vmul.f32 0.03125, %v4004_v17  ;;  %v6049_v1 = vsub.f32 %v4001_v42, %v4009_v23 }
 0xd74   :  { %v6051_v8 = vsub.f32 %v4000_v51, %v4008_v24  ;;  %v4013_v38 = vmul.f32 %v6049_v1, %v6049_v1 }
 0xd76   :  { %v4012_v7 = vmul.f32 %v6051_v8, %v6051_v8  ;;  %v4017_v26 = vsel %vm80_vm0, %v4013_v38, 0.0 }
 0xd78   :  { %v4014_v29 = vsel %vm80_vm0, %v4012_v7, 0.0 }
 0xd79   :  { %4015 = vadd.xlane.f32.xlu0 %v4014_v29 }
 0xd7d   :  { %4018 = vadd.xlane.f32.xlu0 %v4017_v26 }
 0xe02   :  { %v4016_v41 = vpop.xlane.xlu0 %4015 }
 0xe03   :  { %v4020_v25 = vmul.f32 0.03125, %v4016_v41 }
 0xe05   :  { %v4022_v47 = vadd.f32 1e-05, %v4020_v25 }
 0xe06   :  { %v4019_v4 = vpop.xlane.xlu0 %4018 }
 0xe07   :  { %5047 = vrsqrt.f32 %v4022_v47  ;;  %v4021_v57 = vmul.f32 0.03125, %v4019_v4 }
 0xe09   :  { %v4023_v34 = vadd.f32 1e-05, %v4021_v57 }
 0xe0b   :  { %5049 = vrsqrt.f32 %v4023_v34 }
 0xe14   :  { %v5048_v48 = vpop.eup %5047 }
 0xe15   :  { %v4026_v43 = vmul.f32 %v5048_v48, %v6051_v8 }
 0xe17   :  { %v4032_v18 = vmul.f32 %v4378_v49, %v4026_v43 }
 0xe18   :  { %v5050_v31 = vpop.eup %5049 }
 0xe19   :  { %v4027_v35 = vmul.f32 %v5050_v31, %v6049_v1  ;;  %v4038_v33 = vadd.f32 %v4379_v52, %v4032_v18 }
 0xe1b   :  { %v4033_v63 = vmul.f32 %v4378_v49, %v4027_v35  ;;  %4855 = vmatprep.mubr.msk.f32.mxu1 %vm80_vm0, %v4038_v33 }
 0xe1d   :  { %v4039_v60 = vadd.f32 %v4379_v52, %v4033_v63 }
 0xe1f   :  { %4856 = vmatmul.mubr.msk.f32.vlgmr.msra.gmra.mxu1 %vm80_vm0, %v4039_v60 }
 0xedf   :  { %v4857_v56 = vpop.f32.mrf.mxu1 }
 0xee0   :  { %v4122_v20 = vadd.f32 %v4857_v56, %v4380_v45 }
 0xee1   :  { %v4116_v15 = vpop.f32.mrf.mxu1 }
 0xee2   :  { %v4117_v28 = vadd.f32 %v4380_v45, %v4116_v15  ;;  %v4126_v61 = vmax.f32 %v4122_v20, 0.0 }
 0xee4   :  { %v4125_v37 = vmax.f32 %v4117_v28, 0.0 }
 0xee6   :  { %4890 = vmatprep.mubr.f32.mxu0 %v4125_v37 }
 0xee7   :  { %4891 = vmatmul.mubr.f32.vlgmr.msra.gmra.mxu0 %v4126_v61 }
 0xfa7   :  { %v4892_v0 = vpop.f32.mrf.mxu0 }
 0xfa8   :  { %v4203_v19 = vadd.f32 %v4892_v0, %v4383_v32 }
 0xfa9   :  { %v4197_v14 = vpop.f32.mrf.mxu0 }
 0xfaa   :  { %v4207_v55 = vadd.f32 %v4203_v19, %v4039_v60  ;;  %v4198_v50 = vadd.f32 %v4383_v32, %v4197_v14 }
 0xfac   :  { %v4206_v42 = vadd.f32 %v4198_v50, %v4038_v33  ;;  %v4211_v2 = vsel %vm80_vm0, %v4207_v55, 0.0 }
 0xfad   :  { %4212 = vadd.xlane.f32.xlu0 %v4211_v2 }
 0xfae   :  { %v4208_v51 = vsel %vm80_vm0, %v4206_v42, 0.0 }
 0xfaf   :  { %4209 = vadd.xlane.f32.xlu1 %v4208_v51 }
0x1036   :  { %v4213_v16 = vpop.xlane.xlu0 %4212 }
0x1037   :  { %v4215_v44 = vmul.f32 0.03125, %v4213_v16 }
0x1038   :  { %v4210_v13 = vpop.xlane.xlu1 %4209 }
0x1039   :  { %v4217_v23 = vsub.f32 %v4207_v55, %v4215_v44  ;;  %v4214_v17 = vmul.f32 0.03125, %v4210_v13 }
0x103b   :  { %v4216_v24 = vsub.f32 %v4206_v42, %v4214_v17  ;;  %v4219_v1 = vmul.f32 %v4217_v23, %v4217_v23 }
0x103d   :  { %v4223_v8 = vsel %vm80_vm0, %v4219_v1, 0.0  ;;  %v4218_v7 = vmul.f32 %v4216_v24, %v4216_v24 }
0x103e   :  { %4224 = vadd.xlane.f32.xlu0 %v4223_v8 }
0x103f   :  { %v4220_v29 = vsel %vm80_vm0, %v4218_v7, 0.0 }
0x1040   :  { %4221 = vadd.xlane.f32.xlu1 %v4220_v29 }
0x10c7   :  { %v4225_v38 = vpop.xlane.xlu0 %4224 }
0x10c8   :  { %v4227_v26 = vmul.f32 0.03125, %v4225_v38 }
0x10c9   :  { %v4222_v27 = vpop.xlane.xlu1 %4221 }
0x10ca   :  { %v4229_v59 = vadd.f32 1e-05, %v4227_v26  ;;  %v4226_v3 = vmul.f32 0.03125, %v4222_v27 }
0x10cc   :  { %5051 = vrsqrt.f32 %v4229_v59  ;;  %v4228_v12 = vadd.f32 1e-05, %v4226_v3 }
0x10ce   :  { %5053 = vrsqrt.f32 %v4228_v12 }
0x10d9   :  { %v5052_v9 = vpop.eup %5051 }
0x10da   :  { %v4233_v46 = vmul.f32 %v5052_v9, %v4217_v23 }
0x10db   :  { %v5054_v62 = vpop.eup %5053 }
0x10dc   :  { %v4232_v58 = vmul.f32 %v5054_v62, %v4216_v24  ;;  %v4239_v10 = vmul.f32 %v4384_v30, %v4233_v46 }
0x10de   :  { %v4238_v36 = vmul.f32 %v4384_v30, %v4232_v58  ;;  %v4245_v11 = vadd.f32 %v4385_v6, %v4239_v10 }
0x10e0   :  { %v4244_v5 = vadd.f32 %v4385_v6, %v4238_v36  ;;  %v4247_v22 = vsel %vm80_vm0, %v4245_v11, 0.0 }
0x10e1   :  { %4249 = vst [vmem:[#allocation7 + $0x8] sm:$0xff] %v4247_v22 }
0x10e2   :  { %v4246_v40 = vsel %vm80_vm0, %v4244_v5, 0.0 }
0x10e3   :  { %4248 = vst [vmem:[#allocation7] sm:$0xff] %v4246_v40 }
0x10e4   :  { %5115 = shalt.err (!%p5112_p0)
}
0x10e5   :  { %4261 = dma.vmem_to_hbm [thread:$0]  %s4256_s9, 256, %s6077_s2, [#allocation4], %s5131_s12, %s5131_s12, %s5132_s13  }
0x10e6   :  { %5128 = dma.done.wait [#allocation4], 256  }
0x10e7   :  { %5129 = vsyncadd [#allocation4], 4294967040 }
0x10e8   :  { %4265 = vsyncpa [#allocation3], 1 }
0x10e9   :  { %4266 = vsyncpa [#allocation6], 1 }
0x10ea   :  { %4267 = vsyncpa [#allocation4], 1 }

</bundles_post_ra>
